<compile_context>
chip_gen: v6e
topology: v6e:2x2x1
jax: 0.10.0
libtpu: 0.0.40
codegen_flags: <defaults>
</compile_context>

<pallas_src>
import functools
import math

import jax
import jax.numpy as jnp
from jax.experimental import pallas as pl
from jax.experimental.pallas import tpu as pltpu


_VMEM_LIMIT = 56 * 1024 * 1024   # v7x-safe (64 MiB/TC); raise to ~100 MiB on v5e/v6e.
_LN_EPS = 1e-5                   # nn.LayerNorm default


def _pick_row_tile(n, preferred):
    """Largest 8-aligned divisor of n that is <= preferred (or full extent)."""
    if n <= preferred:
        return n
    t = (preferred // 8) * 8
    while t >= 8:
        if n % t == 0:
            return t
        t -= 8
    return n   # fallback: full extent is always a legal block shape


def _pick_lane_tile(n, preferred):
    """Largest 128-aligned divisor of n that is <= preferred (or full extent)."""
    if n <= preferred:
        return n
    t = (preferred // 128) * 128
    while t >= 128:
        if n % t == 0:
            return t
        t -= 128
    return n


# --------------------------- fused QKV projection ----------------------------
def _qkv_kernel(x_ref, wq_ref, bq_ref, wk_ref, bk_ref, wv_ref, bv_ref,
                q_ref, k_ref, v_ref):
    x = x_ref[...]
    for w_ref, b_ref, o_ref in ((wq_ref, bq_ref, q_ref),
                                (wk_ref, bk_ref, k_ref),
                                (wv_ref, bv_ref, v_ref)):
        y = jnp.dot(x, w_ref[...], preferred_element_type=jnp.float32)
        o_ref[...] = (y + b_ref[...].astype(jnp.float32)).astype(o_ref.dtype)


def qkv_projection(x, wq, bq, wk, bk, wv, bv, *, tm=512, tn=512):
    """q, k, v = x @ W{q,k,v} + b{q,k,v}; x is read once per (i, j) tile."""
    B, S, D = x.shape
    m = B * S
    x2 = x.reshape(m, D)
    tm = _pick_row_tile(m, tm)
    tn = _pick_lane_tile(D, tn)
    itemsize = jnp.dtype(x.dtype).itemsize
    cost = pl.CostEstimate(
        flops=int(3 * 2 * m * D * D),
        transcendentals=0,
        bytes_accessed=int(itemsize * (m * D + 3 * D * D + 3 * D + 3 * m * D)),
    )
    x_spec = pl.BlockSpec((tm, D), lambda i, j: (i, 0))
    w_spec = pl.BlockSpec((D, tn), lambda i, j: (0, j))   # weights streamed by N tile
    b_spec = pl.BlockSpec((1, tn), lambda i, j: (0, j))
    o_spec = pl.BlockSpec((tm, tn), lambda i, j: (i, j))
    out_sds = jax.ShapeDtypeStruct((m, D), x.dtype)
    q, k, v = pl.pallas_call(
        _qkv_kernel,
        out_shape=(out_sds, out_sds, out_sds),
        grid_spec=pltpu.PrefetchScalarGridSpec(
            num_scalar_prefetch=0,
            grid=(m // tm, D // tn),
            in_specs=[x_spec, w_spec, b_spec, w_spec, b_spec, w_spec, b_spec],
            out_specs=(o_spec, o_spec, o_spec),
        ),
        compiler_params=pltpu.CompilerParams(
            dimension_semantics=("parallel", "parallel"),
            vmem_limit_bytes=_VMEM_LIMIT),
        cost_estimate=cost,
    )(x2, wq, bq.reshape(1, D), wk, bk.reshape(1, D), wv, bv.reshape(1, D))
    return q.reshape(B, S, D), k.reshape(B, S, D), v.reshape(B, S, D)


# ------------------- flash attention core (all heads fused) ------------------
def _flash_mha_kernel(q_ref, k_ref, v_ref, o_ref, m_sc, l_sc, acc_sc,
                      *, num_heads, head_dim, scale):
    kv = pl.program_id(2)

    @pl.when(kv == 0)
    def _init():
        m_sc[...] = jnp.full(m_sc.shape, -jnp.inf, m_sc.dtype)
        l_sc[...] = jnp.zeros(l_sc.shape, l_sc.dtype)
        acc_sc[...] = jnp.zeros(acc_sc.shape, acc_sc.dtype)

    q = q_ref[0]          # (tq, D)
    k = k_ref[0]          # (tkv, D)
    v = v_ref[0]          # (tkv, D)

    # TODO(synk): optional attention-mask path (mask != None) not implemented;
    # the module's default / demo path is mask=None.
    for h in range(num_heads):
        sl = slice(h * head_dim, (h + 1) * head_dim)
        qh = q[:, sl]
        kh = k[:, sl]
        vh = v[:, sl]
        # Contract over head_dim on the *last* dim of both operands -> no
        # in-kernel K transpose (XLU stays free for the reductions).
        s = jax.lax.dot_general(
            qh, kh, (((1,), (1,)), ((), ())),
            preferred_element_type=jnp.float32) * scale          # (tq, tkv)
        m_prev = m_sc[h]                                         # (tq, 1)
        m_new = jnp.maximum(m_prev, jnp.max(s, axis=-1, keepdims=True))
        alpha = jnp.exp(m_prev - m_new)
        p = jnp.exp(s - m_new)
        l_sc[h] = alpha * l_sc[h] + jnp.sum(p, axis=-1, keepdims=True)
        acc_sc[h] = alpha * acc_sc[h] + jnp.dot(
            p.astype(vh.dtype), vh, preferred_element_type=jnp.float32)
        m_sc[h] = m_new

    @pl.when(kv == pl.num_programs(2) - 1)
    def _finalize():
        # Normalize each head (EUP reciprocal) and emit one lane-dense
        # (tq, D) tile with heads already merged -> no host-side transpose.
        outs = [acc_sc[h] * pl.reciprocal(l_sc[h], approx=True)
                for h in range(num_heads)]
        o_ref[0] = jnp.concatenate(outs, axis=-1).astype(o_ref.dtype)


def flash_mha(q, k, v, *, num_heads, tq=256, tkv=256):
    B, S, D = q.shape
    head_dim = D // num_heads
    tq = _pick_row_tile(S, tq)
    tkv = _pick_row_tile(S, tkv)
    itemsize = jnp.dtype(q.dtype).itemsize
    cost = pl.CostEstimate(
        flops=int(4 * B * S * S * D),
        transcendentals=int(B * num_heads * S * S),
        bytes_accessed=int(itemsize * 4 * B * S * D),
    )
    kernel = functools.partial(_flash_mha_kernel, num_heads=num_heads,
                               head_dim=head_dim, scale=1.0 / math.sqrt(head_dim))
    q_spec = pl.BlockSpec((1, tq, D), lambda b, qi, ki: (b, qi, 0))
    kv_spec = pl.BlockSpec((1, tkv, D), lambda b, qi, ki: (b, ki, 0))
    return pl.pallas_call(
        kernel,
        out_shape=jax.ShapeDtypeStruct((B, S, D), q.dtype),
        grid_spec=pltpu.PrefetchScalarGridSpec(
            num_scalar_prefetch=0,
            grid=(B, S // tq, S // tkv),               # KV (reduction) axis last
            in_specs=[q_spec, kv_spec, kv_spec],
            out_specs=q_spec,
            scratch_shapes=[
                pltpu.VMEM((num_heads, tq, 1), jnp.float32),         # running max
                pltpu.VMEM((num_heads, tq, 1), jnp.float32),         # running sum
                pltpu.VMEM((num_heads, tq, head_dim), jnp.float32),  # output acc
            ]),
        compiler_params=pltpu.CompilerParams(
            dimension_semantics=("parallel", "parallel", "arbitrary"),
            vmem_limit_bytes=_VMEM_LIMIT),
        cost_estimate=cost,
    )(q, k, v)


# -------------- fused: (attn @ Wo + bo) + residual + LayerNorm1 --------------
def _proj_residual_ln_kernel(a_ref, w_ref, b_ref, r_ref, g_ref, bb_ref,
                             o_ref, acc_ref, *, eps):
    kk = pl.program_id(1)

    @pl.when(kk == 0)
    def _init():
        acc_ref[...] = jnp.zeros_like(acc_ref)

    acc_ref[...] += jnp.dot(a_ref[...], w_ref[...],
                            preferred_element_type=jnp.float32)

    @pl.when(kk == pl.num_programs(1) - 1)
    def _finalize():
        z = (acc_ref[...] + b_ref[...].astype(jnp.float32)
             + r_ref[...].astype(jnp.float32))          # residual add (dropout=id)
        mu = jnp.mean(z, axis=-1, keepdims=True)
        zc = z - mu
        var = jnp.mean(zc * zc, axis=-1, keepdims=True)
        inv = jax.lax.rsqrt(var + eps)
        o_ref[...] = (zc * inv * g_ref[...].astype(jnp.float32)
                      + bb_ref[...].astype(jnp.float32)).astype(o_ref.dtype)


def proj_residual_layernorm(a, w, b, resid, gamma, beta, *, tm=512, tk=512,
                            eps=_LN_EPS):
    """LayerNorm(resid + a @ w + b) in one kernel (K-tiled, f32 accumulator)."""
    B, S, d_in = a.shape
    d_out = w.shape[1]
    m = B * S
    a2 = a.reshape(m, d_in)
    r2 = resid.reshape(m, d_out)
    tm = _pick_row_tile(m, tm)
    tk = _pick_lane_tile(d_in, tk)
    itemsize = jnp.dtype(a.dtype).itemsize
    cost = pl.CostEstimate(
        flops=int(2 * m * d_in * d_out),
        transcendentals=0,
        bytes_accessed=int(itemsize * (m * d_in + d_in * d_out + 2 * m * d_out
                                       + 3 * d_out)),
    )
    kernel = functools.partial(_proj_residual_ln_kernel, eps=eps)
    out = pl.pallas_call(
        kernel,
        out_shape=jax.ShapeDtypeStruct((m, d_out), a.dtype),
        grid_spec=pltpu.PrefetchScalarGridSpec(
            num_scalar_prefetch=0,
            grid=(m // tm, d_in // tk),                 # K (reduction) axis last
            in_specs=[
                pl.BlockSpec((tm, tk), lambda i, k: (i, k)),
                pl.BlockSpec((tk, d_out), lambda i, k: (k, 0)),
                pl.BlockSpec((1, d_out), lambda i, k: (0, 0)),
                pl.BlockSpec((tm, d_out), lambda i, k: (i, 0)),
                pl.BlockSpec((1, d_out), lambda i, k: (0, 0)),
                pl.BlockSpec((1, d_out), lambda i, k: (0, 0)),
            ],
            out_specs=pl.BlockSpec((tm, d_out), lambda i, k: (i, 0)),
            scratch_shapes=[pltpu.VMEM((tm, d_out), jnp.float32)]),
        compiler_params=pltpu.CompilerParams(
            dimension_semantics=("parallel", "arbitrary"),
            vmem_limit_bytes=_VMEM_LIMIT),
        cost_estimate=cost,
    )(a2, w, b.reshape(1, d_out), r2, gamma.reshape(1, d_out),
      beta.reshape(1, d_out))
    return out.reshape(B, S, d_out)


# ------------- fused: FFN (fc2(relu(fc1(x)))) + residual + LayerNorm2 --------
def _ffn_residual_ln_kernel(x_ref, w1_ref, b1_ref, w2_ref, b2_ref, g_ref, bb_ref,
                            o_ref, acc_ref, *, eps):
    kk = pl.program_id(1)

    @pl.when(kk == 0)
    def _init():
        acc_ref[...] = jnp.zeros_like(acc_ref)

    h = jnp.dot(x_ref[...], w1_ref[...], preferred_element_type=jnp.float32)
    h = jnp.maximum(h + b1_ref[...].astype(jnp.float32), 0.0)   # bias+ReLU in f32
    acc_ref[...] += jnp.dot(h.astype(w2_ref.dtype), w2_ref[...],
                            preferred_element_type=jnp.float32)

    @pl.when(kk == pl.num_programs(1) - 1)
    def _finalize():
        # residual is the FFN input itself (post-LN1 activation).
        z = (acc_ref[...] + b2_ref[...].astype(jnp.float32)
             + x_ref[...].astype(jnp.float32))
        mu = jnp.mean(z, axis=-1, keepdims=True)
        zc = z - mu
        var = jnp.mean(zc * zc, axis=-1, keepdims=True)
        inv = jax.lax.rsqrt(var + eps)
        o_ref[...] = (zc * inv * g_ref[...].astype(jnp.float32)
                      + bb_ref[...].astype(jnp.float32)).astype(o_ref.dtype)


def ffn_residual_layernorm(x, w1, b1, w2, b2, gamma, beta, *, tm=256, tff=512,
                           eps=_LN_EPS):
    """LayerNorm(x + fc2(relu(fc1(x)))); d_ff reduction-tiled with f32 acc.

    Per-generation retune: on v7x (64 MiB VMEM) drop tff to 256 or pass bf16
    weights; on v6e/v5e (128 MiB VMEM) tm/tff can grow to 512/1024.
    """
    B, S, D = x.shape
    d_ff = w1.shape[1]
    m = B * S
    x2 = x.reshape(m, D)
    tm = _pick_row_tile(m, tm)
    tff = _pick_lane_tile(d_ff, tff)
    itemsize = jnp.dtype(x.dtype).itemsize
    cost = pl.CostEstimate(
        flops=int(2 * 2 * m * D * d_ff),
        transcendentals=0,
        bytes_accessed=int(itemsize * (m * D + 2 * D * d_ff + d_ff + m * D
                                       + 3 * D)),
    )
    kernel = functools.partial(_ffn_residual_ln_kernel, eps=eps)
    out = pl.pallas_call(
        kernel,
        out_shape=jax.ShapeDtypeStruct((m, D), x.dtype),
        grid_spec=pltpu.PrefetchScalarGridSpec(
            num_scalar_prefetch=0,
            grid=(m // tm, d_ff // tff),                # d_ff (reduction) last
            in_specs=[
                pl.BlockSpec((tm, D), lambda i, k: (i, 0)),
                pl.BlockSpec((D, tff), lambda i, k: (0, k)),
                pl.BlockSpec((1, tff), lambda i, k: (0, k)),
                pl.BlockSpec((tff, D), lambda i, k: (k, 0)),
                pl.BlockSpec((1, D), lambda i, k: (0, 0)),
                pl.BlockSpec((1, D), lambda i, k: (0, 0)),
                pl.BlockSpec((1, D), lambda i, k: (0, 0)),
            ],
            out_specs=pl.BlockSpec((tm, D), lambda i, k: (i, 0)),
            scratch_shapes=[pltpu.VMEM((tm, D), jnp.float32)]),
        compiler_params=pltpu.CompilerParams(
            dimension_semantics=("parallel", "arbitrary"),
            vmem_limit_bytes=_VMEM_LIMIT),
        cost_estimate=cost,
    )(x2, w1, b1.reshape(1, d_ff), w2, b2.reshape(1, D),
      gamma.reshape(1, D), beta.reshape(1, D))
    return out.reshape(B, S, D)


# ------------------------------- decoder layer -------------------------------
def decoder_layer(x, params, *, num_heads, mask=None):
    if mask is not None:
        # TODO(synk): optional attention-mask path not implemented (demo uses mask=None).
        raise NotImplementedError("attention mask not supported in this Pallas port")
    B, S, D = x.shape
    assert D % num_heads == 0

    # Fused QKV projection (no host-side head transposes afterwards).
    q, k, v = qkv_projection(
        x, params["wq"], params["bq"], params["wk"], params["bk"],
        params["wv"], params["bv"])

    # Flash attention core; output already laid out as (B, S, D).
    attn = flash_mha(q, k, v, num_heads=num_heads)

    # dropout(p=0.1) is identity at inference (model.eval()).
    # Fused: W_O projection + residual + LayerNorm1.
    x1 = proj_residual_layernorm(attn, params["wo"], params["bo"], x,
                                 params["ln1_g"], params["ln1_b"])

    # Fused: FFN + residual + LayerNorm2.
    x2 = ffn_residual_layernorm(x1, params["w1"], params["b1"],
                                params["w2"], params["b2"],
                                params["ln2_g"], params["ln2_b"])
    return x2


if __name__ == "__main__":
    batch, seq, d_model, num_heads, d_ff = 2, 8, 32, 4, 64

    key = jax.random.PRNGKey(0)
    keys = jax.random.split(key, 17)

    def rnd(k, shape, scale=0.1):
        return jax.random.normal(k, shape, dtype=jnp.float32) * scale

    x = jax.random.normal(keys[0], (batch, seq, d_model), dtype=jnp.float32)

    params = {
        # attention projections, stored as (in, out) = W^T of PyTorch nn.Linear
        "wq": rnd(keys[1], (d_model, d_model)), "bq": rnd(keys[2], (d_model,)),
        "wk": rnd(keys[3], (d_model, d_model)), "bk": rnd(keys[4], (d_model,)),
        "wv": rnd(keys[5], (d_model, d_model)), "bv": rnd(keys[6], (d_model,)),
        "wo": rnd(keys[7], (d_model, d_model)), "bo": rnd(keys[8], (d_model,)),
        # feed-forward
        "w1": rnd(keys[9], (d_model, d_ff)), "b1": rnd(keys[10], (d_ff,)),
        "w2": rnd(keys[11], (d_ff, d_model)), "b2": rnd(keys[12], (d_model,)),
        # layer norms
        "ln1_g": 1.0 + rnd(keys[13], (d_model,)), "ln1_b": rnd(keys[14], (d_model,)),
        "ln2_g": 1.0 + rnd(keys[15], (d_model,)), "ln2_b": rnd(keys[16], (d_model,)),
    }

    decoder_fn = jax.jit(functools.partial(decoder_layer, num_heads=num_heads))
    out = jax.block_until_ready(decoder_fn(x, params))

    # Pure-JAX reference of the same forward (dropout = identity / eval mode).
    def _ln(z, g, b, eps=_LN_EPS):
        mu = z.mean(-1, keepdims=True)
        var = ((z - mu) ** 2).mean(-1, keepdims=True)
        return (z - mu) / jnp.sqrt(var + eps) * g + b

    def _ref(x, p):
        B, S, D = x.shape
        hd = D // num_heads
        q = (x @ p["wq"] + p["bq"]).reshape(B, S, num_heads, hd).transpose(0, 2, 1, 3)
        k = (x @ p["wk"] + p["bk"]).reshape(B, S, num_heads, hd).transpose(0, 2, 1, 3)
        v = (x @ p["wv"] + p["bv"]).reshape(B, S, num_heads, hd).transpose(0, 2, 1, 3)
        s = jnp.einsum("bhqd,bhkd->bhqk", q, k) / jnp.sqrt(jnp.float32(hd))
        a = jax.nn.softmax(s, axis=-1)
        o = jnp.einsum("bhqk,bhkd->bhqd", a, v).transpose(0, 2, 1, 3).reshape(B, S, D)
        attn = o @ p["wo"] + p["bo"]
        x1 = _ln(x + attn, p["ln1_g"], p["ln1_b"])
        ff = jnp.maximum(x1 @ p["w1"] + p["b1"], 0.0) @ p["w2"] + p["b2"]
        return _ln(x1 + ff, p["ln2_g"], p["ln2_b"])

    with jax.default_matmul_precision("highest"):
        ref = _ref(x, params)

    assert out.shape == (batch, seq, d_model)
    err = float(jnp.max(jnp.abs(out - ref)))
    # tolerance includes the EUP approx-reciprocal in the softmax normalization
    assert jnp.allclose(out, ref, atol=3e-3, rtol=3e-3), f"max abs err = {err}"

    print("KERNEL_OK")
</pallas_src>

<mosaic_0001>
module attributes {stable_mosaic.version = 11 : i64} {
  func.func @_proj_residual_ln_kernel(%arg0: i32, %arg1: i32, %arg2: memref<16x32xf32, #tpu.memory_space<vmem>>, %arg3: memref<32x32xf32, #tpu.memory_space<vmem>>, %arg4: memref<1x32xf32, #tpu.memory_space<vmem>>, %arg5: memref<16x32xf32, #tpu.memory_space<vmem>>, %arg6: memref<1x32xf32, #tpu.memory_space<vmem>>, %arg7: memref<1x32xf32, #tpu.memory_space<vmem>>, %arg8: memref<16x32xf32, #tpu.memory_space<vmem>>, %arg9: memref<16x32xf32, #tpu.memory_space<vmem>>) attributes {dimension_semantics = [#tpu.dimension_semantics<parallel>, #tpu.dimension_semantics<arbitrary>], iteration_bounds = array<i64: 1, 1>, scalar_prefetch = 0 : i64, scratch_operands = 1 : i64, tpu.core_type = #tpu.core_type<tc>, window_params = [{transform_indices = @transform_0, window_bounds = array<i64: 16, 32>}, {transform_indices = @transform_1, window_bounds = array<i64: 32, 32>}, {pipeline_mode = #tpu.pipeline_mode<synchronous>, transform_indices = @transform_2, window_bounds = array<i64: 1, 32>}, {transform_indices = @transform_3, window_bounds = array<i64: 16, 32>}, {pipeline_mode = #tpu.pipeline_mode<synchronous>, transform_indices = @transform_4, window_bounds = array<i64: 1, 32>}, {pipeline_mode = #tpu.pipeline_mode<synchronous>, transform_indices = @transform_5, window_bounds = array<i64: 1, 32>}, {transform_indices = @transform_6, window_bounds = array<i64: 16, 32>}]} {
    %c0_i32 = arith.constant 0 : i32
    %0 = arith.cmpi eq, %arg1, %c0_i32 : i32
    %1 = arith.extui %0 : i1 to i32
    %c0_i32_0 = arith.constant 0 : i32
    %2 = arith.cmpi ne, %1, %c0_i32_0 : i32
    scf.if %2 {
      %cst_10 = arith.constant 0.000000e+00 : f32
      %12 = vector.broadcast %cst_10 : f32 to vector<16x32xf32>
      %c0_11 = arith.constant 0 : index
      %c0_12 = arith.constant 0 : index
      %13 = vector.load %arg9[%c0_11, %c0_12] : memref<16x32xf32, #tpu.memory_space<vmem>>, vector<16x32xf32>
      tpu.vector_store %arg9[%c0_11, %c0_12], %12 {strides = array<i32>} : memref<16x32xf32, #tpu.memory_space<vmem>>, vector<16x32xf32>,
    } else {
    }
    %c0 = arith.constant 0 : index
    %c0_1 = arith.constant 0 : index
    %3 = vector.load %arg9[%c0, %c0_1] : memref<16x32xf32, #tpu.memory_space<vmem>>, vector<16x32xf32>
    %c0_2 = arith.constant 0 : index
    %c0_3 = arith.constant 0 : index
    %4 = vector.load %arg2[%c0_2, %c0_3] : memref<16x32xf32, #tpu.memory_space<vmem>>, vector<16x32xf32>
    %c0_4 = arith.constant 0 : index
    %c0_5 = arith.constant 0 : index
    %5 = vector.load %arg3[%c0_4, %c0_5] : memref<32x32xf32, #tpu.memory_space<vmem>>, vector<32x32xf32>
    %cst = arith.constant dense<0.000000e+00> : vector<16x32xf32>
    %6 = tpu.matmul %4, %5, %cst {dimension_numbers = #tpu.dot_dimension_numbers<[1], [0], [0], [1], [0, 0, 1, 1], [], []>} : vector<16x32xf32>, vector<32x32xf32>, vector<16x32xf32> -> vector<16x32xf32>
    %7 = arith.addf %3, %6 : vector<16x32xf32>
    %c0_6 = arith.constant 0 : index
    %c0_7 = arith.constant 0 : index
    %8 = vector.load %arg9[%c0_6, %c0_7] : memref<16x32xf32, #tpu.memory_space<vmem>>, vector<16x32xf32>
    tpu.vector_store %arg9[%c0_6, %c0_7], %7 {strides = array<i32>} : memref<16x32xf32, #tpu.memory_space<vmem>>, vector<16x32xf32>,
    %c0_i32_8 = arith.constant 0 : i32
    %9 = arith.cmpi eq, %arg1, %c0_i32_8 : i32
    %10 = arith.extui %9 : i1 to i32
    %c0_i32_9 = arith.constant 0 : i32
    %11 = arith.cmpi ne, %10, %c0_i32_9 : i32
    scf.if %11 {
      %c0_10 = arith.constant 0 : index
      %c0_11 = arith.constant 0 : index
      %12 = vector.load %arg9[%c0_10, %c0_11] : memref<16x32xf32, #tpu.memory_space<vmem>>, vector<16x32xf32>
      %c0_12 = arith.constant 0 : index
      %c0_13 = arith.constant 0 : index
      %13 = vector.load %arg4[%c0_12, %c0_13] : memref<1x32xf32, #tpu.memory_space<vmem>>, vector<1x32xf32>
      %14 = vector.broadcast %13 : vector<1x32xf32> to vector<16x32xf32>
      %15 = arith.addf %12, %14 : vector<16x32xf32>
      %c0_14 = arith.constant 0 : index
      %c0_15 = arith.constant 0 : index
      %16 = vector.load %arg5[%c0_14, %c0_15] : memref<16x32xf32, #tpu.memory_space<vmem>>, vector<16x32xf32>
      %17 = arith.addf %15, %16 : vector<16x32xf32>
      %cst_16 = arith.constant dense<0.000000e+00> : vector<16xf32>
      %18 = vector.multi_reduction <add>, %17, %cst_16 [1] : vector<16x32xf32> to vector<16xf32>
      %19 = vector.shape_cast %18 : vector<16xf32> to vector<16x1xf32>
      %cst_17 = arith.constant 3.200000e+01 : f32
      %20 = vector.broadcast %cst_17 : f32 to vector<16x1xf32>
      %21 = arith.divf %19, %20 : vector<16x1xf32>
      %22 = vector.broadcast %21 : vector<16x1xf32> to vector<16x32xf32>
      %23 = arith.subf %17, %22 : vector<16x32xf32>
      %24 = arith.mulf %23, %23 : vector<16x32xf32>
      %cst_18 = arith.constant dense<0.000000e+00> : vector<16xf32>
      %25 = vector.multi_reduction <add>, %24, %cst_18 [1] : vector<16x32xf32> to vector<16xf32>
      %26 = vector.shape_cast %25 : vector<16xf32> to vector<16x1xf32>
      %cst_19 = arith.constant 3.200000e+01 : f32
      %27 = vector.broadcast %cst_19 : f32 to vector<16x1xf32>
      %28 = arith.divf %26, %27 : vector<16x1xf32>
      %cst_20 = arith.constant 9.99999974E-6 : f32
      %29 = vector.broadcast %cst_20 : f32 to vector<16x1xf32>
      %30 = arith.addf %28, %29 : vector<16x1xf32>
      %31 = math.rsqrt %30 : vector<16x1xf32>
      %32 = vector.broadcast %31 : vector<16x1xf32> to vector<16x32xf32>
      %33 = arith.mulf %23, %32 : vector<16x32xf32>
      %c0_21 = arith.constant 0 : index
      %c0_22 = arith.constant 0 : index
      %34 = vector.load %arg6[%c0_21, %c0_22] : memref<1x32xf32, #tpu.memory_space<vmem>>, vector<1x32xf32>
      %35 = vector.broadcast %34 : vector<1x32xf32> to vector<16x32xf32>
      %36 = arith.mulf %33, %35 : vector<16x32xf32>
      %c0_23 = arith.constant 0 : index
      %c0_24 = arith.constant 0 : index
      %37 = vector.load %arg7[%c0_23, %c0_24] : memref<1x32xf32, #tpu.memory_space<vmem>>, vector<1x32xf32>
      %38 = vector.broadcast %37 : vector<1x32xf32> to vector<16x32xf32>
      %39 = arith.addf %36, %38 : vector<16x32xf32>
      %c0_25 = arith.constant 0 : index
      %c0_26 = arith.constant 0 : index
      %40 = vector.load %arg8[%c0_25, %c0_26] : memref<16x32xf32, #tpu.memory_space<vmem>>, vector<16x32xf32>
      tpu.vector_store %arg8[%c0_25, %c0_26], %39 {strides = array<i32>} : memref<16x32xf32, #tpu.memory_space<vmem>>, vector<16x32xf32>,
    } else {
    }
    return
  }
  func.func @transform_0(%arg0: i32, %arg1: i32) -> (i32, i32) {
    %c0_i32 = arith.constant 0 : i32
    return %arg0, %arg1 : i32, i32
  }
  func.func @transform_1(%arg0: i32, %arg1: i32) -> (i32, i32) {
    %c0_i32 = arith.constant 0 : i32
    %c0_i32_0 = arith.constant 0 : i32
    return %arg1, %c0_i32 : i32, i32
  }
  func.func @transform_2(%arg0: i32, %arg1: i32) -> (i32, i32) {
    %c0_i32 = arith.constant 0 : i32
    %c0_i32_0 = arith.constant 0 : i32
    %c0_i32_1 = arith.constant 0 : i32
    return %c0_i32, %c0_i32_0 : i32, i32
  }
  func.func @transform_3(%arg0: i32, %arg1: i32) -> (i32, i32) {
    %c0_i32 = arith.constant 0 : i32
    %c0_i32_0 = arith.constant 0 : i32
    return %arg0, %c0_i32 : i32, i32
  }
  func.func @transform_4(%arg0: i32, %arg1: i32) -> (i32, i32) {
    %c0_i32 = arith.constant 0 : i32
    %c0_i32_0 = arith.constant 0 : i32
    %c0_i32_1 = arith.constant 0 : i32
    return %c0_i32, %c0_i32_0 : i32, i32
  }
  func.func @transform_5(%arg0: i32, %arg1: i32) -> (i32, i32) {
    %c0_i32 = arith.constant 0 : i32
    %c0_i32_0 = arith.constant 0 : i32
    %c0_i32_1 = arith.constant 0 : i32
    return %c0_i32, %c0_i32_0 : i32, i32
  }
  func.func @transform_6(%arg0: i32, %arg1: i32) -> (i32, i32) {
    %c0_i32 = arith.constant 0 : i32
    %c0_i32_0 = arith.constant 0 : i32
    return %arg0, %c0_i32 : i32, i32
  }
}

module attributes {stable_mosaic.version = 11 : i64} {
  func.func @_qkv_kernel(%arg0: i32, %arg1: i32, %arg2: memref<16x32xf32, #tpu.memory_space<vmem>>, %arg3: memref<32x32xf32, #tpu.memory_space<vmem>>, %arg4: memref<1x32xf32, #tpu.memory_space<vmem>>, %arg5: memref<32x32xf32, #tpu.memory_space<vmem>>, %arg6: memref<1x32xf32, #tpu.memory_space<vmem>>, %arg7: memref<32x32xf32, #tpu.memory_space<vmem>>, %arg8: memref<1x32xf32, #tpu.memory_space<vmem>>, %arg9: memref<16x32xf32, #tpu.memory_space<vmem>>, %arg10: memref<16x32xf32, #tpu.memory_space<vmem>>, %arg11: memref<16x32xf32, #tpu.memory_space<vmem>>) attributes {dimension_semantics = [#tpu.dimension_semantics<parallel>, #tpu.dimension_semantics<parallel>], iteration_bounds = array<i64: 1, 1>, scalar_prefetch = 0 : i64, scratch_operands = 0 : i64, tpu.core_type = #tpu.core_type<tc>, window_params = [{transform_indices = @transform_0, window_bounds = array<i64: 16, 32>}, {transform_indices = @transform_1, window_bounds = array<i64: 32, 32>}, {transform_indices = @transform_2, window_bounds = array<i64: 1, 32>}, {transform_indices = @transform_3, window_bounds = array<i64: 32, 32>}, {transform_indices = @transform_4, window_bounds = array<i64: 1, 32>}, {transform_indices = @transform_5, window_bounds = array<i64: 32, 32>}, {transform_indices = @transform_6, window_bounds = array<i64: 1, 32>}, {transform_indices = @transform_7, window_bounds = array<i64: 16, 32>}, {transform_indices = @transform_8, window_bounds = array<i64: 16, 32>}, {transform_indices = @transform_9, window_bounds = array<i64: 16, 32>}]} {
    %c0 = arith.constant 0 : index
    %c0_0 = arith.constant 0 : index
    %0 = vector.load %arg2[%c0, %c0_0] : memref<16x32xf32, #tpu.memory_space<vmem>>, vector<16x32xf32>
    %c0_1 = arith.constant 0 : index
    %c0_2 = arith.constant 0 : index
    %1 = vector.load %arg3[%c0_1, %c0_2] : memref<32x32xf32, #tpu.memory_space<vmem>>, vector<32x32xf32>
    %cst = arith.constant dense<0.000000e+00> : vector<16x32xf32>
    %2 = tpu.matmul %0, %1, %cst {dimension_numbers = #tpu.dot_dimension_numbers<[1], [0], [0], [1], [0, 0, 1, 1], [], []>} : vector<16x32xf32>, vector<32x32xf32>, vector<16x32xf32> -> vector<16x32xf32>
    %c0_3 = arith.constant 0 : index
    %c0_4 = arith.constant 0 : index
    %3 = vector.load %arg4[%c0_3, %c0_4] : memref<1x32xf32, #tpu.memory_space<vmem>>, vector<1x32xf32>
    %4 = vector.broadcast %3 : vector<1x32xf32> to vector<16x32xf32>
    %5 = arith.addf %2, %4 : vector<16x32xf32>
    %c0_5 = arith.constant 0 : index
    %c0_6 = arith.constant 0 : index
    %6 = vector.load %arg9[%c0_5, %c0_6] : memref<16x32xf32, #tpu.memory_space<vmem>>, vector<16x32xf32>
    tpu.vector_store %arg9[%c0_5, %c0_6], %5 {strides = array<i32>} : memref<16x32xf32, #tpu.memory_space<vmem>>, vector<16x32xf32>,
    %c0_7 = arith.constant 0 : index
    %c0_8 = arith.constant 0 : index
    %7 = vector.load %arg5[%c0_7, %c0_8] : memref<32x32xf32, #tpu.memory_space<vmem>>, vector<32x32xf32>
    %cst_9 = arith.constant dense<0.000000e+00> : vector<16x32xf32>
    %8 = tpu.matmul %0, %7, %cst_9 {dimension_numbers = #tpu.dot_dimension_numbers<[1], [0], [0], [1], [0, 0, 1, 1], [], []>} : vector<16x32xf32>, vector<32x32xf32>, vector<16x32xf32> -> vector<16x32xf32>
    %c0_10 = arith.constant 0 : index
    %c0_11 = arith.constant 0 : index
    %9 = vector.load %arg6[%c0_10, %c0_11] : memref<1x32xf32, #tpu.memory_space<vmem>>, vector<1x32xf32>
    %10 = vector.broadcast %9 : vector<1x32xf32> to vector<16x32xf32>
    %11 = arith.addf %8, %10 : vector<16x32xf32>
    %c0_12 = arith.constant 0 : index
    %c0_13 = arith.constant 0 : index
    %12 = vector.load %arg10[%c0_12, %c0_13] : memref<16x32xf32, #tpu.memory_space<vmem>>, vector<16x32xf32>
    tpu.vector_store %arg10[%c0_12, %c0_13], %11 {strides = array<i32>} : memref<16x32xf32, #tpu.memory_space<vmem>>, vector<16x32xf32>,
    %c0_14 = arith.constant 0 : index
    %c0_15 = arith.constant 0 : index
    %13 = vector.load %arg7[%c0_14, %c0_15] : memref<32x32xf32, #tpu.memory_space<vmem>>, vector<32x32xf32>
    %cst_16 = arith.constant dense<0.000000e+00> : vector<16x32xf32>
    %14 = tpu.matmul %0, %13, %cst_16 {dimension_numbers = #tpu.dot_dimension_numbers<[1], [0], [0], [1], [0, 0, 1, 1], [], []>} : vector<16x32xf32>, vector<32x32xf32>, vector<16x32xf32> -> vector<16x32xf32>
    %c0_17 = arith.constant 0 : index
    %c0_18 = arith.constant 0 : index
    %15 = vector.load %arg8[%c0_17, %c0_18] : memref<1x32xf32, #tpu.memory_space<vmem>>, vector<1x32xf32>
    %16 = vector.broadcast %15 : vector<1x32xf32> to vector<16x32xf32>
    %17 = arith.addf %14, %16 : vector<16x32xf32>
    %c0_19 = arith.constant 0 : index
    %c0_20 = arith.constant 0 : index
    %18 = vector.load %arg11[%c0_19, %c0_20] : memref<16x32xf32, #tpu.memory_space<vmem>>, vector<16x32xf32>
    tpu.vector_store %arg11[%c0_19, %c0_20], %17 {strides = array<i32>} : memref<16x32xf32, #tpu.memory_space<vmem>>, vector<16x32xf32>,
    return
  }
  func.func @transform_0(%arg0: i32, %arg1: i32) -> (i32, i32) {
    %c0_i32 = arith.constant 0 : i32
    %c0_i32_0 = arith.constant 0 : i32
    return %arg0, %c0_i32 : i32, i32
  }
  func.func @transform_1(%arg0: i32, %arg1: i32) -> (i32, i32) {
    %c0_i32 = arith.constant 0 : i32
    %c0_i32_0 = arith.constant 0 : i32
    return %c0_i32, %arg1 : i32, i32
  }
  func.func @transform_2(%arg0: i32, %arg1: i32) -> (i32, i32) {
    %c0_i32 = arith.constant 0 : i32
    %c0_i32_0 = arith.constant 0 : i32
    return %c0_i32, %arg1 : i32, i32
  }
  func.func @transform_3(%arg0: i32, %arg1: i32) -> (i32, i32) {
    %c0_i32 = arith.constant 0 : i32
    %c0_i32_0 = arith.constant 0 : i32
    return %c0_i32, %arg1 : i32, i32
  }
  func.func @transform_4(%arg0: i32, %arg1: i32) -> (i32, i32) {
    %c0_i32 = arith.constant 0 : i32
    %c0_i32_0 = arith.constant 0 : i32
    return %c0_i32, %arg1 : i32, i32
  }
  func.func @transform_5(%arg0: i32, %arg1: i32) -> (i32, i32) {
    %c0_i32 = arith.constant 0 : i32
    %c0_i32_0 = arith.constant 0 : i32
    return %c0_i32, %arg1 : i32, i32
  }
  func.func @transform_6(%arg0: i32, %arg1: i32) -> (i32, i32) {
    %c0_i32 = arith.constant 0 : i32
    %c0_i32_0 = arith.constant 0 : i32
    return %c0_i32, %arg1 : i32, i32
  }
  func.func @transform_7(%arg0: i32, %arg1: i32) -> (i32, i32) {
    %c0_i32 = arith.constant 0 : i32
    return %arg0, %arg1 : i32, i32
  }
  func.func @transform_8(%arg0: i32, %arg1: i32) -> (i32, i32) {
    %c0_i32 = arith.constant 0 : i32
    return %arg0, %arg1 : i32, i32
  }
  func.func @transform_9(%arg0: i32, %arg1: i32) -> (i32, i32) {
    %c0_i32 = arith.constant 0 : i32
    return %arg0, %arg1 : i32, i32
  }
}

module attributes {stable_mosaic.version = 11 : i64} {
  func.func @_flash_mha_kernel(%arg0: i32, %arg1: i32, %arg2: i32, %arg3: memref<1x8x32xf32, #tpu.memory_space<vmem>>, %arg4: memref<1x8x32xf32, #tpu.memory_space<vmem>>, %arg5: memref<1x8x32xf32, #tpu.memory_space<vmem>>, %arg6: memref<1x8x32xf32, #tpu.memory_space<vmem>>, %arg7: memref<4x8x1xf32, #tpu.memory_space<vmem>>, %arg8: memref<4x8x1xf32, #tpu.memory_space<vmem>>, %arg9: memref<4x8x8xf32, #tpu.memory_space<vmem>>) attributes {dimension_semantics = [#tpu.dimension_semantics<parallel>, #tpu.dimension_semantics<parallel>, #tpu.dimension_semantics<arbitrary>], iteration_bounds = array<i64: 2, 1, 1>, scalar_prefetch = 0 : i64, scratch_operands = 3 : i64, tpu.core_type = #tpu.core_type<tc>, window_params = [{transform_indices = @transform_0, window_bounds = array<i64: 1, 8, 32>}, {transform_indices = @transform_1, window_bounds = array<i64: 1, 8, 32>}, {transform_indices = @transform_2, window_bounds = array<i64: 1, 8, 32>}, {transform_indices = @transform_3, window_bounds = array<i64: 1, 8, 32>}]} {
    %c0_i32 = arith.constant 0 : i32
    %0 = arith.cmpi eq, %arg2, %c0_i32 : i32
    %1 = arith.extui %0 : i1 to i32
    %c0_i32_0 = arith.constant 0 : i32
    %2 = arith.cmpi ne, %1, %c0_i32_0 : i32
    scf.if %2 {
      %cst_99 = arith.constant 0xFF800000 : f32
      %160 = vector.broadcast %cst_99 : f32 to vector<4x8x1xf32>
      %c0_100 = arith.constant 0 : index
      %c0_101 = arith.constant 0 : index
      %c0_102 = arith.constant 0 : index
      %161 = vector.load %arg7[%c0_100, %c0_101, %c0_102] : memref<4x8x1xf32, #tpu.memory_space<vmem>>, vector<4x8x1xf32>
      tpu.vector_store %arg7[%c0_100, %c0_101, %c0_102], %160 {strides = array<i32>} : memref<4x8x1xf32, #tpu.memory_space<vmem>>, vector<4x8x1xf32>,
      %cst_103 = arith.constant 0.000000e+00 : f32
      %162 = vector.broadcast %cst_103 : f32 to vector<4x8x1xf32>
      %c0_104 = arith.constant 0 : index
      %c0_105 = arith.constant 0 : index
      %c0_106 = arith.constant 0 : index
      %163 = vector.load %arg8[%c0_104, %c0_105, %c0_106] : memref<4x8x1xf32, #tpu.memory_space<vmem>>, vector<4x8x1xf32>
      tpu.vector_store %arg8[%c0_104, %c0_105, %c0_106], %162 {strides = array<i32>} : memref<4x8x1xf32, #tpu.memory_space<vmem>>, vector<4x8x1xf32>,
      %cst_107 = arith.constant 0.000000e+00 : f32
      %164 = vector.broadcast %cst_107 : f32 to vector<4x8x8xf32>
      %c0_108 = arith.constant 0 : index
      %c0_109 = arith.constant 0 : index
      %c0_110 = arith.constant 0 : index
      %165 = vector.load %arg9[%c0_108, %c0_109, %c0_110] : memref<4x8x8xf32, #tpu.memory_space<vmem>>, vector<4x8x8xf32>
      tpu.vector_store %arg9[%c0_108, %c0_109, %c0_110], %164 {strides = array<i32>} : memref<4x8x8xf32, #tpu.memory_space<vmem>>, vector<4x8x8xf32>,
    } else {
    }
    %c0 = arith.constant 0 : index
    %c0_1 = arith.constant 0 : index
    %c0_2 = arith.constant 0 : index
    %3 = vector.load %arg3[%c0, %c0_1, %c0_2] : memref<1x8x32xf32, #tpu.memory_space<vmem>>, vector<1x8x32xf32>
    %4 = vector.shape_cast %3 : vector<1x8x32xf32> to vector<8x32xf32>
    %c0_3 = arith.constant 0 : index
    %c0_4 = arith.constant 0 : index
    %c0_5 = arith.constant 0 : index
    %5 = vector.load %arg4[%c0_3, %c0_4, %c0_5] : memref<1x8x32xf32, #tpu.memory_space<vmem>>, vector<1x8x32xf32>
    %6 = vector.shape_cast %5 : vector<1x8x32xf32> to vector<8x32xf32>
    %c0_6 = arith.constant 0 : index
    %c0_7 = arith.constant 0 : index
    %c0_8 = arith.constant 0 : index
    %7 = vector.load %arg5[%c0_6, %c0_7, %c0_8] : memref<1x8x32xf32, #tpu.memory_space<vmem>>, vector<1x8x32xf32>
    %8 = vector.shape_cast %7 : vector<1x8x32xf32> to vector<8x32xf32>
    %9 = vector.extract_strided_slice %4 {offsets = [0, 0], sizes = [8, 8], strides = [1, 1]} : vector<8x32xf32> to vector<8x8xf32>
    %10 = vector.extract_strided_slice %6 {offsets = [0, 0], sizes = [8, 8], strides = [1, 1]} : vector<8x32xf32> to vector<8x8xf32>
    %11 = vector.extract_strided_slice %8 {offsets = [0, 0], sizes = [8, 8], strides = [1, 1]} : vector<8x32xf32> to vector<8x8xf32>
    %cst = arith.constant dense<0.000000e+00> : vector<8x8xf32>
    %12 = tpu.matmul %9, %10, %cst {dimension_numbers = #tpu.dot_dimension_numbers<[1], [1], [0], [0], [0, 0, 1, 0], [], []>} : vector<8x8xf32>, vector<8x8xf32>, vector<8x8xf32> -> vector<8x8xf32>
    %cst_9 = arith.constant 0.353553385 : f32
    %13 = vector.broadcast %cst_9 : f32 to vector<8x8xf32>
    %14 = arith.mulf %12, %13 : vector<8x8xf32>
    %c0_10 = arith.constant 0 : index
    %c0_11 = arith.constant 0 : index
    %c0_12 = arith.constant 0 : index
    %15 = vector.load %arg7[%c0_10, %c0_11, %c0_12] : memref<4x8x1xf32, #tpu.memory_space<vmem>>, vector<1x8x1xf32>
    %16 = vector.shape_cast %15 : vector<1x8x1xf32> to vector<8x1xf32>
    %cst_13 = arith.constant dense<0xFF800000> : vector<8xf32>
    %17 = vector.multi_reduction <maximumf>, %14, %cst_13 [1] : vector<8x8xf32> to vector<8xf32>
    %18 = vector.shape_cast %17 : vector<8xf32> to vector<8x1xf32>
    %19 = arith.maximumf %16, %18 : vector<8x1xf32>
    %20 = arith.subf %16, %19 : vector<8x1xf32>
    %21 = math.exp %20 : vector<8x1xf32>
    %22 = vector.broadcast %19 : vector<8x1xf32> to vector<8x8xf32>
    %23 = arith.subf %14, %22 : vector<8x8xf32>
    %24 = math.exp %23 : vector<8x8xf32>
    %c0_14 = arith.constant 0 : index
    %c0_15 = arith.constant 0 : index
    %c0_16 = arith.constant 0 : index
    %25 = vector.load %arg8[%c0_14, %c0_15, %c0_16] : memref<4x8x1xf32, #tpu.memory_space<vmem>>, vector<1x8x1xf32>
    %26 = vector.shape_cast %25 : vector<1x8x1xf32> to vector<8x1xf32>
    %27 = arith.mulf %21, %26 : vector<8x1xf32>
    %cst_17 = arith.constant dense<0.000000e+00> : vector<8xf32>
    %28 = vector.multi_reduction <add>, %24, %cst_17 [1] : vector<8x8xf32> to vector<8xf32>
    %29 = vector.shape_cast %28 : vector<8xf32> to vector<8x1xf32>
    %30 = arith.addf %27, %29 : vector<8x1xf32>
    %c0_18 = arith.constant 0 : index
    %c0_19 = arith.constant 0 : index
    %c0_20 = arith.constant 0 : index
    %31 = vector.load %arg8[%c0_18, %c0_19, %c0_20] : memref<4x8x1xf32, #tpu.memory_space<vmem>>, vector<1x8x1xf32>
    %32 = vector.shape_cast %31 : vector<1x8x1xf32> to vector<8x1xf32>
    %33 = vector.shape_cast %30 : vector<8x1xf32> to vector<1x8x1xf32>
    tpu.vector_store %arg8[%c0_18, %c0_19, %c0_20], %33 {strides = array<i32>} : memref<4x8x1xf32, #tpu.memory_space<vmem>>, vector<1x8x1xf32>,
    %c0_21 = arith.constant 0 : index
    %c0_22 = arith.constant 0 : index
    %c0_23 = arith.constant 0 : index
    %34 = vector.load %arg9[%c0_21, %c0_22, %c0_23] : memref<4x8x8xf32, #tpu.memory_space<vmem>>, vector<1x8x8xf32>
    %35 = vector.shape_cast %34 : vector<1x8x8xf32> to vector<8x8xf32>
    %36 = vector.broadcast %21 : vector<8x1xf32> to vector<8x8xf32>
    %37 = arith.mulf %36, %35 : vector<8x8xf32>
    %cst_24 = arith.constant dense<0.000000e+00> : vector<8x8xf32>
    %38 = tpu.matmul %24, %11, %cst_24 {dimension_numbers = #tpu.dot_dimension_numbers<[1], [0], [0], [1], [0, 0, 1, 1], [], []>} : vector<8x8xf32>, vector<8x8xf32>, vector<8x8xf32> -> vector<8x8xf32>
    %39 = arith.addf %37, %38 : vector<8x8xf32>
    %c0_25 = arith.constant 0 : index
    %c0_26 = arith.constant 0 : index
    %c0_27 = arith.constant 0 : index
    %40 = vector.load %arg9[%c0_25, %c0_26, %c0_27] : memref<4x8x8xf32, #tpu.memory_space<vmem>>, vector<1x8x8xf32>
    %41 = vector.shape_cast %40 : vector<1x8x8xf32> to vector<8x8xf32>
    %42 = vector.shape_cast %39 : vector<8x8xf32> to vector<1x8x8xf32>
    tpu.vector_store %arg9[%c0_25, %c0_26, %c0_27], %42 {strides = array<i32>} : memref<4x8x8xf32, #tpu.memory_space<vmem>>, vector<1x8x8xf32>,
    %c0_28 = arith.constant 0 : index
    %c0_29 = arith.constant 0 : index
    %c0_30 = arith.constant 0 : index
    %43 = vector.load %arg7[%c0_28, %c0_29, %c0_30] : memref<4x8x1xf32, #tpu.memory_space<vmem>>, vector<1x8x1xf32>
    %44 = vector.shape_cast %43 : vector<1x8x1xf32> to vector<8x1xf32>
    %45 = vector.shape_cast %19 : vector<8x1xf32> to vector<1x8x1xf32>
    tpu.vector_store %arg7[%c0_28, %c0_29, %c0_30], %45 {strides = array<i32>} : memref<4x8x1xf32, #tpu.memory_space<vmem>>, vector<1x8x1xf32>,
    %46 = vector.extract_strided_slice %4 {offsets = [0, 8], sizes = [8, 8], strides = [1, 1]} : vector<8x32xf32> to vector<8x8xf32>
    %47 = vector.extract_strided_slice %6 {offsets = [0, 8], sizes = [8, 8], strides = [1, 1]} : vector<8x32xf32> to vector<8x8xf32>
    %48 = vector.extract_strided_slice %8 {offsets = [0, 8], sizes = [8, 8], strides = [1, 1]} : vector<8x32xf32> to vector<8x8xf32>
    %cst_31 = arith.constant dense<0.000000e+00> : vector<8x8xf32>
    %49 = tpu.matmul %46, %47, %cst_31 {dimension_numbers = #tpu.dot_dimension_numbers<[1], [1], [0], [0], [0, 0, 1, 0], [], []>} : vector<8x8xf32>, vector<8x8xf32>, vector<8x8xf32> -> vector<8x8xf32>
    %cst_32 = arith.constant 0.353553385 : f32
    %50 = vector.broadcast %cst_32 : f32 to vector<8x8xf32>
    %51 = arith.mulf %49, %50 : vector<8x8xf32>
    %c1 = arith.constant 1 : index
    %c0_33 = arith.constant 0 : index
    %c0_34 = arith.constant 0 : index
    %52 = vector.load %arg7[%c1, %c0_33, %c0_34] : memref<4x8x1xf32, #tpu.memory_space<vmem>>, vector<1x8x1xf32>
    %53 = vector.shape_cast %52 : vector<1x8x1xf32> to vector<8x1xf32>
    %cst_35 = arith.constant dense<0xFF800000> : vector<8xf32>
    %54 = vector.multi_reduction <maximumf>, %51, %cst_35 [1] : vector<8x8xf32> to vector<8xf32>
    %55 = vector.shape_cast %54 : vector<8xf32> to vector<8x1xf32>
    %56 = arith.maximumf %53, %55 : vector<8x1xf32>
    %57 = arith.subf %53, %56 : vector<8x1xf32>
    %58 = math.exp %57 : vector<8x1xf32>
    %59 = vector.broadcast %56 : vector<8x1xf32> to vector<8x8xf32>
    %60 = arith.subf %51, %59 : vector<8x8xf32>
    %61 = math.exp %60 : vector<8x8xf32>
    %c1_36 = arith.constant 1 : index
    %c0_37 = arith.constant 0 : index
    %c0_38 = arith.constant 0 : index
    %62 = vector.load %arg8[%c1_36, %c0_37, %c0_38] : memref<4x8x1xf32, #tpu.memory_space<vmem>>, vector<1x8x1xf32>
    %63 = vector.shape_cast %62 : vector<1x8x1xf32> to vector<8x1xf32>
    %64 = arith.mulf %58, %63 : vector<8x1xf32>
    %cst_39 = arith.constant dense<0.000000e+00> : vector<8xf32>
    %65 = vector.multi_reduction <add>, %61, %cst_39 [1] : vector<8x8xf32> to vector<8xf32>
    %66 = vector.shape_cast %65 : vector<8xf32> to vector<8x1xf32>
    %67 = arith.addf %64, %66 : vector<8x1xf32>
    %c1_40 = arith.constant 1 : index
    %c0_41 = arith.constant 0 : index
    %c0_42 = arith.constant 0 : index
    %68 = vector.load %arg8[%c1_40, %c0_41, %c0_42] : memref<4x8x1xf32, #tpu.memory_space<vmem>>, vector<1x8x1xf32>
    %69 = vector.shape_cast %68 : vector<1x8x1xf32> to vector<8x1xf32>
    %70 = vector.shape_cast %67 : vector<8x1xf32> to vector<1x8x1xf32>
    tpu.vector_store %arg8[%c1_40, %c0_41, %c0_42], %70 {strides = array<i32>} : memref<4x8x1xf32, #tpu.memory_space<vmem>>, vector<1x8x1xf32>,
    %c1_43 = arith.constant 1 : index
    %c0_44 = arith.constant 0 : index
    %c0_45 = arith.constant 0 : index
    %71 = vector.load %arg9[%c1_43, %c0_44, %c0_45] : memref<4x8x8xf32, #tpu.memory_space<vmem>>, vector<1x8x8xf32>
    %72 = vector.shape_cast %71 : vector<1x8x8xf32> to vector<8x8xf32>
    %73 = vector.broadcast %58 : vector<8x1xf32> to vector<8x8xf32>
    %74 = arith.mulf %73, %72 : vector<8x8xf32>
    %cst_46 = arith.constant dense<0.000000e+00> : vector<8x8xf32>
    %75 = tpu.matmul %61, %48, %cst_46 {dimension_numbers = #tpu.dot_dimension_numbers<[1], [0], [0], [1], [0, 0, 1, 1], [], []>} : vector<8x8xf32>, vector<8x8xf32>, vector<8x8xf32> -> vector<8x8xf32>
    %76 = arith.addf %74, %75 : vector<8x8xf32>
    %c1_47 = arith.constant 1 : index
    %c0_48 = arith.constant 0 : index
    %c0_49 = arith.constant 0 : index
    %77 = vector.load %arg9[%c1_47, %c0_48, %c0_49] : memref<4x8x8xf32, #tpu.memory_space<vmem>>, vector<1x8x8xf32>
    %78 = vector.shape_cast %77 : vector<1x8x8xf32> to vector<8x8xf32>
    %79 = vector.shape_cast %76 : vector<8x8xf32> to vector<1x8x8xf32>
    tpu.vector_store %arg9[%c1_47, %c0_48, %c0_49], %79 {strides = array<i32>} : memref<4x8x8xf32, #tpu.memory_space<vmem>>, vector<1x8x8xf32>,
    %c1_50 = arith.constant 1 : index
    %c0_51 = arith.constant 0 : index
    %c0_52 = arith.constant 0 : index
    %80 = vector.load %arg7[%c1_50, %c0_51, %c0_52] : memref<4x8x1xf32, #tpu.memory_space<vmem>>, vector<1x8x1xf32>
    %81 = vector.shape_cast %80 : vector<1x8x1xf32> to vector<8x1xf32>
    %82 = vector.shape_cast %56 : vector<8x1xf32> to vector<1x8x1xf32>
    tpu.vector_store %arg7[%c1_50, %c0_51, %c0_52], %82 {strides = array<i32>} : memref<4x8x1xf32, #tpu.memory_space<vmem>>, vector<1x8x1xf32>,
    %83 = vector.extract_strided_slice %4 {offsets = [0, 16], sizes = [8, 8], strides = [1, 1]} : vector<8x32xf32> to vector<8x8xf32>
    %84 = vector.extract_strided_slice %6 {offsets = [0, 16], sizes = [8, 8], strides = [1, 1]} : vector<8x32xf32> to vector<8x8xf32>
    %85 = vector.extract_strided_slice %8 {offsets = [0, 16], sizes = [8, 8], strides = [1, 1]} : vector<8x32xf32> to vector<8x8xf32>
    %cst_53 = arith.constant dense<0.000000e+00> : vector<8x8xf32>
    %86 = tpu.matmul %83, %84, %cst_53 {dimension_numbers = #tpu.dot_dimension_numbers<[1], [1], [0], [0], [0, 0, 1, 0], [], []>} : vector<8x8xf32>, vector<8x8xf32>, vector<8x8xf32> -> vector<8x8xf32>
    %cst_54 = arith.constant 0.353553385 : f32
    %87 = vector.broadcast %cst_54 : f32 to vector<8x8xf32>
    %88 = arith.mulf %86, %87 : vector<8x8xf32>
    %c2 = arith.constant 2 : index
    %c0_55 = arith.constant 0 : index
    %c0_56 = arith.constant 0 : index
    %89 = vector.load %arg7[%c2, %c0_55, %c0_56] : memref<4x8x1xf32, #tpu.memory_space<vmem>>, vector<1x8x1xf32>
    %90 = vector.shape_cast %89 : vector<1x8x1xf32> to vector<8x1xf32>
    %cst_57 = arith.constant dense<0xFF800000> : vector<8xf32>
    %91 = vector.multi_reduction <maximumf>, %88, %cst_57 [1] : vector<8x8xf32> to vector<8xf32>
    %92 = vector.shape_cast %91 : vector<8xf32> to vector<8x1xf32>
    %93 = arith.maximumf %90, %92 : vector<8x1xf32>
    %94 = arith.subf %90, %93 : vector<8x1xf32>
    %95 = math.exp %94 : vector<8x1xf32>
    %96 = vector.broadcast %93 : vector<8x1xf32> to vector<8x8xf32>
    %97 = arith.subf %88, %96 : vector<8x8xf32>
    %98 = math.exp %97 : vector<8x8xf32>
    %c2_58 = arith.constant 2 : index
    %c0_59 = arith.constant 0 : index
    %c0_60 = arith.constant 0 : index
    %99 = vector.load %arg8[%c2_58, %c0_59, %c0_60] : memref<4x8x1xf32, #tpu.memory_space<vmem>>, vector<1x8x1xf32>
    %100 = vector.shape_cast %99 : vector<1x8x1xf32> to vector<8x1xf32>
    %101 = arith.mulf %95, %100 : vector<8x1xf32>
    %cst_61 = arith.constant dense<0.000000e+00> : vector<8xf32>
    %102 = vector.multi_reduction <add>, %98, %cst_61 [1] : vector<8x8xf32> to vector<8xf32>
    %103 = vector.shape_cast %102 : vector<8xf32> to vector<8x1xf32>
    %104 = arith.addf %101, %103 : vector<8x1xf32>
    %c2_62 = arith.constant 2 : index
    %c0_63 = arith.constant 0 : index
    %c0_64 = arith.constant 0 : index
    %105 = vector.load %arg8[%c2_62, %c0_63, %c0_64] : memref<4x8x1xf32, #tpu.memory_space<vmem>>, vector<1x8x1xf32>
    %106 = vector.shape_cast %105 : vector<1x8x1xf32> to vector<8x1xf32>
    %107 = vector.shape_cast %104 : vector<8x1xf32> to vector<1x8x1xf32>
    tpu.vector_store %arg8[%c2_62, %c0_63, %c0_64], %107 {strides = array<i32>} : memref<4x8x1xf32, #tpu.memory_space<vmem>>, vector<1x8x1xf32>,
    %c2_65 = arith.constant 2 : index
    %c0_66 = arith.constant 0 : index
    %c0_67 = arith.constant 0 : index
    %108 = vector.load %arg9[%c2_65, %c0_66, %c0_67] : memref<4x8x8xf32, #tpu.memory_space<vmem>>, vector<1x8x8xf32>
    %109 = vector.shape_cast %108 : vector<1x8x8xf32> to vector<8x8xf32>
    %110 = vector.broadcast %95 : vector<8x1xf32> to vector<8x8xf32>
    %111 = arith.mulf %110, %109 : vector<8x8xf32>
    %cst_68 = arith.constant dense<0.000000e+00> : vector<8x8xf32>
    %112 = tpu.matmul %98, %85, %cst_68 {dimension_numbers = #tpu.dot_dimension_numbers<[1], [0], [0], [1], [0, 0, 1, 1], [], []>} : vector<8x8xf32>, vector<8x8xf32>, vector<8x8xf32> -> vector<8x8xf32>
    %113 = arith.addf %111, %112 : vector<8x8xf32>
    %c2_69 = arith.constant 2 : index
    %c0_70 = arith.constant 0 : index
    %c0_71 = arith.constant 0 : index
    %114 = vector.load %arg9[%c2_69, %c0_70, %c0_71] : memref<4x8x8xf32, #tpu.memory_space<vmem>>, vector<1x8x8xf32>
    %115 = vector.shape_cast %114 : vector<1x8x8xf32> to vector<8x8xf32>
    %116 = vector.shape_cast %113 : vector<8x8xf32> to vector<1x8x8xf32>
    tpu.vector_store %arg9[%c2_69, %c0_70, %c0_71], %116 {strides = array<i32>} : memref<4x8x8xf32, #tpu.memory_space<vmem>>, vector<1x8x8xf32>,
    %c2_72 = arith.constant 2 : index
    %c0_73 = arith.constant 0 : index
    %c0_74 = arith.constant 0 : index
    %117 = vector.load %arg7[%c2_72, %c0_73, %c0_74] : memref<4x8x1xf32, #tpu.memory_space<vmem>>, vector<1x8x1xf32>
    %118 = vector.shape_cast %117 : vector<1x8x1xf32> to vector<8x1xf32>
    %119 = vector.shape_cast %93 : vector<8x1xf32> to vector<1x8x1xf32>
    tpu.vector_store %arg7[%c2_72, %c0_73, %c0_74], %119 {strides = array<i32>} : memref<4x8x1xf32, #tpu.memory_space<vmem>>, vector<1x8x1xf32>,
    %120 = vector.extract_strided_slice %4 {offsets = [0, 24], sizes = [8, 8], strides = [1, 1]} : vector<8x32xf32> to vector<8x8xf32>
    %121 = vector.extract_strided_slice %6 {offsets = [0, 24], sizes = [8, 8], strides = [1, 1]} : vector<8x32xf32> to vector<8x8xf32>
    %122 = vector.extract_strided_slice %8 {offsets = [0, 24], sizes = [8, 8], strides = [1, 1]} : vector<8x32xf32> to vector<8x8xf32>
    %cst_75 = arith.constant dense<0.000000e+00> : vector<8x8xf32>
    %123 = tpu.matmul %120, %121, %cst_75 {dimension_numbers = #tpu.dot_dimension_numbers<[1], [1], [0], [0], [0, 0, 1, 0], [], []>} : vector<8x8xf32>, vector<8x8xf32>, vector<8x8xf32> -> vector<8x8xf32>
    %cst_76 = arith.constant 0.353553385 : f32
    %124 = vector.broadcast %cst_76 : f32 to vector<8x8xf32>
    %125 = arith.mulf %123, %124 : vector<8x8xf32>
    %c3 = arith.constant 3 : index
    %c0_77 = arith.constant 0 : index
    %c0_78 = arith.constant 0 : index
    %126 = vector.load %arg7[%c3, %c0_77, %c0_78] : memref<4x8x1xf32, #tpu.memory_space<vmem>>, vector<1x8x1xf32>
    %127 = vector.shape_cast %126 : vector<1x8x1xf32> to vector<8x1xf32>
    %cst_79 = arith.constant dense<0xFF800000> : vector<8xf32>
    %128 = vector.multi_reduction <maximumf>, %125, %cst_79 [1] : vector<8x8xf32> to vector<8xf32>
    %129 = vector.shape_cast %128 : vector<8xf32> to vector<8x1xf32>
    %130 = arith.maximumf %127, %129 : vector<8x1xf32>
    %131 = arith.subf %127, %130 : vector<8x1xf32>
    %132 = math.exp %131 : vector<8x1xf32>
    %133 = vector.broadcast %130 : vector<8x1xf32> to vector<8x8xf32>
    %134 = arith.subf %125, %133 : vector<8x8xf32>
    %135 = math.exp %134 : vector<8x8xf32>
    %c3_80 = arith.constant 3 : index
    %c0_81 = arith.constant 0 : index
    %c0_82 = arith.constant 0 : index
    %136 = vector.load %arg8[%c3_80, %c0_81, %c0_82] : memref<4x8x1xf32, #tpu.memory_space<vmem>>, vector<1x8x1xf32>
    %137 = vector.shape_cast %136 : vector<1x8x1xf32> to vector<8x1xf32>
    %138 = arith.mulf %132, %137 : vector<8x1xf32>
    %cst_83 = arith.constant dense<0.000000e+00> : vector<8xf32>
    %139 = vector.multi_reduction <add>, %135, %cst_83 [1] : vector<8x8xf32> to vector<8xf32>
    %140 = vector.shape_cast %139 : vector<8xf32> to vector<8x1xf32>
    %141 = arith.addf %138, %140 : vector<8x1xf32>
    %c3_84 = arith.constant 3 : index
    %c0_85 = arith.constant 0 : index
    %c0_86 = arith.constant 0 : index
    %142 = vector.load %arg8[%c3_84, %c0_85, %c0_86] : memref<4x8x1xf32, #tpu.memory_space<vmem>>, vector<1x8x1xf32>
    %143 = vector.shape_cast %142 : vector<1x8x1xf32> to vector<8x1xf32>
    %144 = vector.shape_cast %141 : vector<8x1xf32> to vector<1x8x1xf32>
    tpu.vector_store %arg8[%c3_84, %c0_85, %c0_86], %144 {strides = array<i32>} : memref<4x8x1xf32, #tpu.memory_space<vmem>>, vector<1x8x1xf32>,
    %c3_87 = arith.constant 3 : index
    %c0_88 = arith.constant 0 : index
    %c0_89 = arith.constant 0 : index
    %145 = vector.load %arg9[%c3_87, %c0_88, %c0_89] : memref<4x8x8xf32, #tpu.memory_space<vmem>>, vector<1x8x8xf32>
    %146 = vector.shape_cast %145 : vector<1x8x8xf32> to vector<8x8xf32>
    %147 = vector.broadcast %132 : vector<8x1xf32> to vector<8x8xf32>
    %148 = arith.mulf %147, %146 : vector<8x8xf32>
    %cst_90 = arith.constant dense<0.000000e+00> : vector<8x8xf32>
    %149 = tpu.matmul %135, %122, %cst_90 {dimension_numbers = #tpu.dot_dimension_numbers<[1], [0], [0], [1], [0, 0, 1, 1], [], []>} : vector<8x8xf32>, vector<8x8xf32>, vector<8x8xf32> -> vector<8x8xf32>
    %150 = arith.addf %148, %149 : vector<8x8xf32>
    %c3_91 = arith.constant 3 : index
    %c0_92 = arith.constant 0 : index
    %c0_93 = arith.constant 0 : index
    %151 = vector.load %arg9[%c3_91, %c0_92, %c0_93] : memref<4x8x8xf32, #tpu.memory_space<vmem>>, vector<1x8x8xf32>
    %152 = vector.shape_cast %151 : vector<1x8x8xf32> to vector<8x8xf32>
    %153 = vector.shape_cast %150 : vector<8x8xf32> to vector<1x8x8xf32>
    tpu.vector_store %arg9[%c3_91, %c0_92, %c0_93], %153 {strides = array<i32>} : memref<4x8x8xf32, #tpu.memory_space<vmem>>, vector<1x8x8xf32>,
    %c3_94 = arith.constant 3 : index
    %c0_95 = arith.constant 0 : index
    %c0_96 = arith.constant 0 : index
    %154 = vector.load %arg7[%c3_94, %c0_95, %c0_96] : memref<4x8x1xf32, #tpu.memory_space<vmem>>, vector<1x8x1xf32>
    %155 = vector.shape_cast %154 : vector<1x8x1xf32> to vector<8x1xf32>
    %156 = vector.shape_cast %130 : vector<8x1xf32> to vector<1x8x1xf32>
    tpu.vector_store %arg7[%c3_94, %c0_95, %c0_96], %156 {strides = array<i32>} : memref<4x8x1xf32, #tpu.memory_space<vmem>>, vector<1x8x1xf32>,
    %c0_i32_97 = arith.constant 0 : i32
    %157 = arith.cmpi eq, %arg2, %c0_i32_97 : i32
    %158 = arith.extui %157 : i1 to i32
    %c0_i32_98 = arith.constant 0 : i32
    %159 = arith.cmpi ne, %158, %c0_i32_98 : i32
    scf.if %159 {
      %c0_99 = arith.constant 0 : index
      %c0_100 = arith.constant 0 : index
      %c0_101 = arith.constant 0 : index
      %160 = vector.load %arg9[%c0_99, %c0_100, %c0_101] : memref<4x8x8xf32, #tpu.memory_space<vmem>>, vector<1x8x8xf32>
      %161 = vector.shape_cast %160 : vector<1x8x8xf32> to vector<8x8xf32>
      %c0_102 = arith.constant 0 : index
      %c0_103 = arith.constant 0 : index
      %c0_104 = arith.constant 0 : index
      %162 = vector.load %arg8[%c0_102, %c0_103, %c0_104] : memref<4x8x1xf32, #tpu.memory_space<vmem>>, vector<1x8x1xf32>
      %163 = vector.shape_cast %162 : vector<1x8x1xf32> to vector<8x1xf32>
      %164 = tpu.reciprocal %163 {approx = true} : vector<8x1xf32> -> vector<8x1xf32>
      %165 = vector.broadcast %164 : vector<8x1xf32> to vector<8x8xf32>
      %166 = arith.mulf %161, %165 : vector<8x8xf32>
      %c1_105 = arith.constant 1 : index
      %c0_106 = arith.constant 0 : index
      %c0_107 = arith.constant 0 : index
      %167 = vector.load %arg9[%c1_105, %c0_106, %c0_107] : memref<4x8x8xf32, #tpu.memory_space<vmem>>, vector<1x8x8xf32>
      %168 = vector.shape_cast %167 : vector<1x8x8xf32> to vector<8x8xf32>
      %c1_108 = arith.constant 1 : index
      %c0_109 = arith.constant 0 : index
      %c0_110 = arith.constant 0 : index
      %169 = vector.load %arg8[%c1_108, %c0_109, %c0_110] : memref<4x8x1xf32, #tpu.memory_space<vmem>>, vector<1x8x1xf32>
      %170 = vector.shape_cast %169 : vector<1x8x1xf32> to vector<8x1xf32>
      %171 = tpu.reciprocal %170 {approx = true} : vector<8x1xf32> -> vector<8x1xf32>
      %172 = vector.broadcast %171 : vector<8x1xf32> to vector<8x8xf32>
      %173 = arith.mulf %168, %172 : vector<8x8xf32>
      %c2_111 = arith.constant 2 : index
      %c0_112 = arith.constant 0 : index
      %c0_113 = arith.constant 0 : index
      %174 = vector.load %arg9[%c2_111, %c0_112, %c0_113] : memref<4x8x8xf32, #tpu.memory_space<vmem>>, vector<1x8x8xf32>
      %175 = vector.shape_cast %174 : vector<1x8x8xf32> to vector<8x8xf32>
      %c2_114 = arith.constant 2 : index
      %c0_115 = arith.constant 0 : index
      %c0_116 = arith.constant 0 : index
      %176 = vector.load %arg8[%c2_114, %c0_115, %c0_116] : memref<4x8x1xf32, #tpu.memory_space<vmem>>, vector<1x8x1xf32>
      %177 = vector.shape_cast %176 : vector<1x8x1xf32> to vector<8x1xf32>
      %178 = tpu.reciprocal %177 {approx = true} : vector<8x1xf32> -> vector<8x1xf32>
      %179 = vector.broadcast %178 : vector<8x1xf32> to vector<8x8xf32>
      %180 = arith.mulf %175, %179 : vector<8x8xf32>
      %c3_117 = arith.constant 3 : index
      %c0_118 = arith.constant 0 : index
      %c0_119 = arith.constant 0 : index
      %181 = vector.load %arg9[%c3_117, %c0_118, %c0_119] : memref<4x8x8xf32, #tpu.memory_space<vmem>>, vector<1x8x8xf32>
      %182 = vector.shape_cast %181 : vector<1x8x8xf32> to vector<8x8xf32>
      %c3_120 = arith.constant 3 : index
      %c0_121 = arith.constant 0 : index
      %c0_122 = arith.constant 0 : index
      %183 = vector.load %arg8[%c3_120, %c0_121, %c0_122] : memref<4x8x1xf32, #tpu.memory_space<vmem>>, vector<1x8x1xf32>
      %184 = vector.shape_cast %183 : vector<1x8x1xf32> to vector<8x1xf32>
      %185 = tpu.reciprocal %184 {approx = true} : vector<8x1xf32> -> vector<8x1xf32>
      %186 = vector.broadcast %185 : vector<8x1xf32> to vector<8x8xf32>
      %187 = arith.mulf %182, %186 : vector<8x8xf32>
      %188 = tpu.concatenate %166, %173, %180, %187 in 1 : vector<8x8xf32>, vector<8x8xf32>, vector<8x8xf32>, vector<8x8xf32> -> vector<8x32xf32>
      %c0_123 = arith.constant 0 : index
      %c0_124 = arith.constant 0 : index
      %c0_125 = arith.constant 0 : index
      %189 = vector.load %arg6[%c0_123, %c0_124, %c0_125] : memref<1x8x32xf32, #tpu.memory_space<vmem>>, vector<1x8x32xf32>
      %190 = vector.shape_cast %189 : vector<1x8x32xf32> to vector<8x32xf32>
      %191 = vector.shape_cast %188 : vector<8x32xf32> to vector<1x8x32xf32>
      tpu.vector_store %arg6[%c0_123, %c0_124, %c0_125], %191 {strides = array<i32>} : memref<1x8x32xf32, #tpu.memory_space<vmem>>, vector<1x8x32xf32>,
    } else {
    }
    return
  }
  func.func @transform_0(%arg0: i32, %arg1: i32, %arg2: i32) -> (i32, i32, i32) {
    %c0_i32 = arith.constant 0 : i32
    %c0_i32_0 = arith.constant 0 : i32
    return %arg0, %arg1, %c0_i32 : i32, i32, i32
  }
  func.func @transform_1(%arg0: i32, %arg1: i32, %arg2: i32) -> (i32, i32, i32) {
    %c0_i32 = arith.constant 0 : i32
    %c0_i32_0 = arith.constant 0 : i32
    return %arg0, %arg2, %c0_i32 : i32, i32, i32
  }
  func.func @transform_2(%arg0: i32, %arg1: i32, %arg2: i32) -> (i32, i32, i32) {
    %c0_i32 = arith.constant 0 : i32
    %c0_i32_0 = arith.constant 0 : i32
    return %arg0, %arg2, %c0_i32 : i32, i32, i32
  }
  func.func @transform_3(%arg0: i32, %arg1: i32, %arg2: i32) -> (i32, i32, i32) {
    %c0_i32 = arith.constant 0 : i32
    %c0_i32_0 = arith.constant 0 : i32
    return %arg0, %arg1, %c0_i32 : i32, i32, i32
  }
}

module attributes {stable_mosaic.version = 11 : i64} {
  func.func @_ffn_residual_ln_kernel(%arg0: i32, %arg1: i32, %arg2: memref<16x32xf32, #tpu.memory_space<vmem>>, %arg3: memref<32x64xf32, #tpu.memory_space<vmem>>, %arg4: memref<1x64xf32, #tpu.memory_space<vmem>>, %arg5: memref<64x32xf32, #tpu.memory_space<vmem>>, %arg6: memref<1x32xf32, #tpu.memory_space<vmem>>, %arg7: memref<1x32xf32, #tpu.memory_space<vmem>>, %arg8: memref<1x32xf32, #tpu.memory_space<vmem>>, %arg9: memref<16x32xf32, #tpu.memory_space<vmem>>, %arg10: memref<16x32xf32, #tpu.memory_space<vmem>>) attributes {dimension_semantics = [#tpu.dimension_semantics<parallel>, #tpu.dimension_semantics<arbitrary>], iteration_bounds = array<i64: 1, 1>, scalar_prefetch = 0 : i64, scratch_operands = 1 : i64, tpu.core_type = #tpu.core_type<tc>, window_params = [{transform_indices = @transform_0, window_bounds = array<i64: 16, 32>}, {transform_indices = @transform_1, window_bounds = array<i64: 32, 64>}, {transform_indices = @transform_2, window_bounds = array<i64: 1, 64>}, {transform_indices = @transform_3, window_bounds = array<i64: 64, 32>}, {pipeline_mode = #tpu.pipeline_mode<synchronous>, transform_indices = @transform_4, window_bounds = array<i64: 1, 32>}, {pipeline_mode = #tpu.pipeline_mode<synchronous>, transform_indices = @transform_5, window_bounds = array<i64: 1, 32>}, {pipeline_mode = #tpu.pipeline_mode<synchronous>, transform_indices = @transform_6, window_bounds = array<i64: 1, 32>}, {transform_indices = @transform_7, window_bounds = array<i64: 16, 32>}]} {
    %c0_i32 = arith.constant 0 : i32
    %0 = arith.cmpi eq, %arg1, %c0_i32 : i32
    %1 = arith.extui %0 : i1 to i32
    %c0_i32_0 = arith.constant 0 : i32
    %2 = arith.cmpi ne, %1, %c0_i32_0 : i32
    scf.if %2 {
      %cst_16 = arith.constant 0.000000e+00 : f32
      %19 = vector.broadcast %cst_16 : f32 to vector<16x32xf32>
      %c0_17 = arith.constant 0 : index
      %c0_18 = arith.constant 0 : index
      %20 = vector.load %arg10[%c0_17, %c0_18] : memref<16x32xf32, #tpu.memory_space<vmem>>, vector<16x32xf32>
      tpu.vector_store %arg10[%c0_17, %c0_18], %19 {strides = array<i32>} : memref<16x32xf32, #tpu.memory_space<vmem>>, vector<16x32xf32>,
    } else {
    }
    %c0 = arith.constant 0 : index
    %c0_1 = arith.constant 0 : index
    %3 = vector.load %arg2[%c0, %c0_1] : memref<16x32xf32, #tpu.memory_space<vmem>>, vector<16x32xf32>
    %c0_2 = arith.constant 0 : index
    %c0_3 = arith.constant 0 : index
    %4 = vector.load %arg3[%c0_2, %c0_3] : memref<32x64xf32, #tpu.memory_space<vmem>>, vector<32x64xf32>
    %cst = arith.constant dense<0.000000e+00> : vector<16x64xf32>
    %5 = tpu.matmul %3, %4, %cst {dimension_numbers = #tpu.dot_dimension_numbers<[1], [0], [0], [1], [0, 0, 1, 1], [], []>} : vector<16x32xf32>, vector<32x64xf32>, vector<16x64xf32> -> vector<16x64xf32>
    %c0_4 = arith.constant 0 : index
    %c0_5 = arith.constant 0 : index
    %6 = vector.load %arg4[%c0_4, %c0_5] : memref<1x64xf32, #tpu.memory_space<vmem>>, vector<1x64xf32>
    %7 = vector.broadcast %6 : vector<1x64xf32> to vector<16x64xf32>
    %8 = arith.addf %5, %7 : vector<16x64xf32>
    %cst_6 = arith.constant 0.000000e+00 : f32
    %9 = vector.broadcast %cst_6 : f32 to vector<16x64xf32>
    %10 = arith.maximumf %8, %9 : vector<16x64xf32>
    %c0_7 = arith.constant 0 : index
    %c0_8 = arith.constant 0 : index
    %11 = vector.load %arg10[%c0_7, %c0_8] : memref<16x32xf32, #tpu.memory_space<vmem>>, vector<16x32xf32>
    %c0_9 = arith.constant 0 : index
    %c0_10 = arith.constant 0 : index
    %12 = vector.load %arg5[%c0_9, %c0_10] : memref<64x32xf32, #tpu.memory_space<vmem>>, vector<64x32xf32>
    %cst_11 = arith.constant dense<0.000000e+00> : vector<16x32xf32>
    %13 = tpu.matmul %10, %12, %cst_11 {dimension_numbers = #tpu.dot_dimension_numbers<[1], [0], [0], [1], [0, 0, 1, 1], [], []>} : vector<16x64xf32>, vector<64x32xf32>, vector<16x32xf32> -> vector<16x32xf32>
    %14 = arith.addf %11, %13 : vector<16x32xf32>
    %c0_12 = arith.constant 0 : index
    %c0_13 = arith.constant 0 : index
    %15 = vector.load %arg10[%c0_12, %c0_13] : memref<16x32xf32, #tpu.memory_space<vmem>>, vector<16x32xf32>
    tpu.vector_store %arg10[%c0_12, %c0_13], %14 {strides = array<i32>} : memref<16x32xf32, #tpu.memory_space<vmem>>, vector<16x32xf32>,
    %c0_i32_14 = arith.constant 0 : i32
    %16 = arith.cmpi eq, %arg1, %c0_i32_14 : i32
    %17 = arith.extui %16 : i1 to i32
    %c0_i32_15 = arith.constant 0 : i32
    %18 = arith.cmpi ne, %17, %c0_i32_15 : i32
    scf.if %18 {
      %c0_16 = arith.constant 0 : index
      %c0_17 = arith.constant 0 : index
      %19 = vector.load %arg10[%c0_16, %c0_17] : memref<16x32xf32, #tpu.memory_space<vmem>>, vector<16x32xf32>
      %c0_18 = arith.constant 0 : index
      %c0_19 = arith.constant 0 : index
      %20 = vector.load %arg6[%c0_18, %c0_19] : memref<1x32xf32, #tpu.memory_space<vmem>>, vector<1x32xf32>
      %21 = vector.broadcast %20 : vector<1x32xf32> to vector<16x32xf32>
      %22 = arith.addf %19, %21 : vector<16x32xf32>
      %c0_20 = arith.constant 0 : index
      %c0_21 = arith.constant 0 : index
      %23 = vector.load %arg2[%c0_20, %c0_21] : memref<16x32xf32, #tpu.memory_space<vmem>>, vector<16x32xf32>
      %24 = arith.addf %22, %23 : vector<16x32xf32>
      %cst_22 = arith.constant dense<0.000000e+00> : vector<16xf32>
      %25 = vector.multi_reduction <add>, %24, %cst_22 [1] : vector<16x32xf32> to vector<16xf32>
      %26 = vector.shape_cast %25 : vector<16xf32> to vector<16x1xf32>
      %cst_23 = arith.constant 3.200000e+01 : f32
      %27 = vector.broadcast %cst_23 : f32 to vector<16x1xf32>
      %28 = arith.divf %26, %27 : vector<16x1xf32>
      %29 = vector.broadcast %28 : vector<16x1xf32> to vector<16x32xf32>
      %30 = arith.subf %24, %29 : vector<16x32xf32>
      %31 = arith.mulf %30, %30 : vector<16x32xf32>
      %cst_24 = arith.constant dense<0.000000e+00> : vector<16xf32>
      %32 = vector.multi_reduction <add>, %31, %cst_24 [1] : vector<16x32xf32> to vector<16xf32>
      %33 = vector.shape_cast %32 : vector<16xf32> to vector<16x1xf32>
      %cst_25 = arith.constant 3.200000e+01 : f32
      %34 = vector.broadcast %cst_25 : f32 to vector<16x1xf32>
      %35 = arith.divf %33, %34 : vector<16x1xf32>
      %cst_26 = arith.constant 9.99999974E-6 : f32
      %36 = vector.broadcast %cst_26 : f32 to vector<16x1xf32>
      %37 = arith.addf %35, %36 : vector<16x1xf32>
      %38 = math.rsqrt %37 : vector<16x1xf32>
      %39 = vector.broadcast %38 : vector<16x1xf32> to vector<16x32xf32>
      %40 = arith.mulf %30, %39 : vector<16x32xf32>
      %c0_27 = arith.constant 0 : index
      %c0_28 = arith.constant 0 : index
      %41 = vector.load %arg7[%c0_27, %c0_28] : memref<1x32xf32, #tpu.memory_space<vmem>>, vector<1x32xf32>
      %42 = vector.broadcast %41 : vector<1x32xf32> to vector<16x32xf32>
      %43 = arith.mulf %40, %42 : vector<16x32xf32>
      %c0_29 = arith.constant 0 : index
      %c0_30 = arith.constant 0 : index
      %44 = vector.load %arg8[%c0_29, %c0_30] : memref<1x32xf32, #tpu.memory_space<vmem>>, vector<1x32xf32>
      %45 = vector.broadcast %44 : vector<1x32xf32> to vector<16x32xf32>
      %46 = arith.addf %43, %45 : vector<16x32xf32>
      %c0_31 = arith.constant 0 : index
      %c0_32 = arith.constant 0 : index
      %47 = vector.load %arg9[%c0_31, %c0_32] : memref<16x32xf32, #tpu.memory_space<vmem>>, vector<16x32xf32>
      tpu.vector_store %arg9[%c0_31, %c0_32], %46 {strides = array<i32>} : memref<16x32xf32, #tpu.memory_space<vmem>>, vector<16x32xf32>,
    } else {
    }
    return
  }
  func.func @transform_0(%arg0: i32, %arg1: i32) -> (i32, i32) {
    %c0_i32 = arith.constant 0 : i32
    %c0_i32_0 = arith.constant 0 : i32
    return %arg0, %c0_i32 : i32, i32
  }
  func.func @transform_1(%arg0: i32, %arg1: i32) -> (i32, i32) {
    %c0_i32 = arith.constant 0 : i32
    %c0_i32_0 = arith.constant 0 : i32
    return %c0_i32, %arg1 : i32, i32
  }
  func.func @transform_2(%arg0: i32, %arg1: i32) -> (i32, i32) {
    %c0_i32 = arith.constant 0 : i32
    %c0_i32_0 = arith.constant 0 : i32
    return %c0_i32, %arg1 : i32, i32
  }
  func.func @transform_3(%arg0: i32, %arg1: i32) -> (i32, i32) {
    %c0_i32 = arith.constant 0 : i32
    %c0_i32_0 = arith.constant 0 : i32
    return %arg1, %c0_i32 : i32, i32
  }
  func.func @transform_4(%arg0: i32, %arg1: i32) -> (i32, i32) {
    %c0_i32 = arith.constant 0 : i32
    %c0_i32_0 = arith.constant 0 : i32
    %c0_i32_1 = arith.constant 0 : i32
    return %c0_i32, %c0_i32_0 : i32, i32
  }
  func.func @transform_5(%arg0: i32, %arg1: i32) -> (i32, i32) {
    %c0_i32 = arith.constant 0 : i32
    %c0_i32_0 = arith.constant 0 : i32
    %c0_i32_1 = arith.constant 0 : i32
    return %c0_i32, %c0_i32_0 : i32, i32
  }
  func.func @transform_6(%arg0: i32, %arg1: i32) -> (i32, i32) {
    %c0_i32 = arith.constant 0 : i32
    %c0_i32_0 = arith.constant 0 : i32
    %c0_i32_1 = arith.constant 0 : i32
    return %c0_i32, %c0_i32_0 : i32, i32
  }
  func.func @transform_7(%arg0: i32, %arg1: i32) -> (i32, i32) {
    %c0_i32 = arith.constant 0 : i32
    %c0_i32_0 = arith.constant 0 : i32
    return %arg0, %c0_i32 : i32, i32
  }
}

</mosaic_0001>

<bundles_post_ra>
// kernel: decoder_layer.7
= control target key start
LH: loop header
LB: loop body
LE: loop exit
PB: predicated region body
PF: predicated region fallthrough
CT: control target
= control target key end

     0   :  { %vm31_vm0 = vcmask 261120   ;;  %s509_s0 = inlined_call_operand.vmem [shape: f32[16,32], index: 0, kind: input, shape index: {}]   ;;  %s510_s1 = inlined_call_operand.vmem [shape: f32[32,64], index: 1, kind: input, shape index: {}]   ;;  %s511_s2 = inlined_call_operand.vmem [shape: f32[1,64], index: 2, kind: input, shape index: {}]   ;;  %s512_s3 = inlined_call_operand.vmem [shape: f32[64,32], index: 3, kind: input, shape index: {}]   ;;  %s513_s4 = inlined_call_operand.vmem [shape: f32[1,32], index: 4, kind: input, shape index: {}]   ;;  %s514_s5 = inlined_call_operand.vmem [shape: f32[1,32], index: 5, kind: input, shape index: {}]   ;;  %s515_s6 = inlined_call_operand.vmem [shape: f32[1,32], index: 6, kind: input, shape index: {}]   ;;  %s516_s7 = inlined_call_operand.hbm [shape: f32[16,32], index: 7, kind: output, shape index: {}]  }
   0x1   :  { %v39_v0 = vld [vmem:[%s510_s1 + $0x18] sm:$0xff]  ;;  %v38_v1 = vld [vmem:[%s510_s1 + $0x10] sm:$0xff]  ;;  %v445_v2 = vld [vmem:[%s509_s0] sm:$0xff] }
   0x2   :  { %332 = vmatprep.subr.mxu0 %v39_v0  ;;  %v37_v3 = vld [vmem:[%s510_s1 + $0x8] sm:$0xff]  ;;  %340 = vmatprep.mubr.msk.f32.mxu0 %vm31_vm0, %v445_v2  ;;  %v140_v4 = vld [vmem:[%s512_s3 + $0x38] sm:$0xff]  ;;  %v139_v5 = vld [vmem:[%s512_s3 + $0x30] sm:$0xff] }
   0x3   :  { %333 = vmatpush3.msra.mxu0 %v39_v0  ;;  %343 = vmatprep.subr.mxu1 %v140_v4 }
   0x4   :  { %334 = vmatprep.subr.mxu0 %v38_v1 }
   0x5   :  { %12 = vsyncpa [#allocation4], 0  ;;  %335 = vmatpush3.msra.mxu0 %v38_v1  ;;  %v36_v6 = vld [vmem:[%s510_s1] sm:$0xff]  ;;  %344 = vmatpush3.msra.mxu1 %v140_v4  ;;  %v138_v7 = vld [vmem:[%s512_s3 + $0x28] sm:$0xff]  ;;  %v392_v14 = vmov 0.0   ;;  %vm141_vm1 = vcmask 523264  }
   0x6   :  { %336 = vmatprep.subr.mxu0 %v37_v3  ;;  %345 = vmatprep.subr.mxu1 %v139_v5  ;;  %v35_v8 = vld [vmem:[%s509_s0 + $0x8] sm:$0xff]  ;;  %v137_v9 = vld [vmem:[%s512_s3 + $0x20] sm:$0xff]  ;;  %v136_v10 = vld [vmem:[%s512_s3 + $0x18] sm:$0xff]  ;;  %33 = vst.msk [vmem:[#allocation2 + $0x8] sm:$0xff] %vm31_vm0, %v392_v14  ;;  %s393_s9 = smov [#allocation3]  }
   0x7   :  { %337 = vmatpush3.msra.mxu0 %v37_v3  ;;  %346 = vmatpush3.msra.mxu1 %v139_v5  ;;  %v135_v11 = vld [vmem:[%s512_s3 + $0x10] sm:$0xff]  ;;  %v134_v12 = vld [vmem:[%s512_s3 + $0x8] sm:$0xff]  ;;  %v133_v13 = vld [vmem:[%s512_s3] sm:$0xff]  ;;  %32 = vst.msk [vmem:[#allocation2] sm:$0xff] %vm31_vm0, %v392_v14  ;;  %s297_s10 = sshll.u32 %s393_s9, 4  ;;  %s298_s10 = int_to_ptr.vmem [resolvable:$true] %s297_s10 }
   0x8   :  { %338 = vmatprep.subr.mxu0 %v36_v6  ;;  %347 = vmatprep.subr.mxu1 %v138_v7  ;;  %v308_v15 = vld [vmem:[%s511_s2] ss:$0 sm:$0xff]  ;;  %s370_s11 = scalar_lea.vmem %s298_s10, 256  ;;  %p375_p1 = scmp.lt.s32.totalorder %s298_s10, %s298_s10 }
   0x9   :  { %339 = vmatpush3.msra.mxu0 %v36_v6  ;;  %348 = vmatpush3.msra.mxu1 %v138_v7  ;;  %v313_v28 = vld [vmem:[%s513_s4] ss:$0 sm:$0xff]  ;;  %p371_p0 = scmp.ne.s32.totalorder %s298_s10, %s370_s11  ;;  %p376_p2 = scmp.lt.s32.totalorder %s370_s11, %s370_s11 }
   0xa   :  { %341 = vmatmul.mubr.msk.f32.vlgmr.msra.gmra.mxu0 %vm31_vm0, %v35_v8  ;;  %349 = vmatprep.subr.mxu1 %v137_v9  ;;  %v314_v54 = vld [vmem:[%s514_s5] ss:$0 sm:$0xff] }
   0xb   :  { %350 = vmatpush3.msra.mxu1 %v137_v9  ;;  %v315_v56 = vld [vmem:[%s515_s6] ss:$0 sm:$0xff]  ;;  %p377_p3 = por %p376_p2, %p375_p1 }
   0xc   :  { %351 = vmatprep.subr.mxu1 %v136_v10 }
   0xd   :  { %352 = vmatpush3.msra.mxu1 %v136_v10  ;;  %v132_v22 = vld [vmem:[#allocation2 + $0x8] sm:$0xff]  ;;  %p378_p4 = pnand %p377_p3, %p371_p0 }
   0xe   :  { %353 = vmatprep.subr.mxu1 %v135_v11  ;;  %v131_v24 = vld [vmem:[#allocation2] sm:$0xff] }
   0xf   :  { %354 = vmatpush3.msra.mxu1 %v135_v11 }
  0x10   :  { %355 = vmatprep.subr.mxu1 %v134_v12 }
  0x11   :  { %356 = vmatpush3.msra.mxu1 %v134_v12 }
  0x12   :  { %357 = vmatprep.subr.mxu1 %v133_v13 }
  0x13   :  { %358 = vmatpush3.msra.mxu1 %v133_v13 }
  0xca   :  { %v342_v16 = vpop.f32.mrf.mxu0 }
  0xcb   :  { %v126_v17 = vadd.f32 %v342_v16, %v308_v15 }
  0xcc   :  { %v120_v18 = vpop.f32.mrf.mxu0 }
  0xcd   :  { %v121_v19 = vadd.f32 %v308_v15, %v120_v18  ;;  %v130_v21 = vmax.f32 %v126_v17, 0.0 }
  0xcf   :  { %v129_v20 = vmax.f32 %v121_v19, 0.0 }
  0xd1   :  { %359 = vmatprep.mubr.msk.f32.mxu1 %vm141_vm1, %v129_v20 }
  0xd2   :  { %360 = vmatmul.mubr.msk.f32.vlgmr.msra.gmra.mxu1 %vm141_vm1, %v130_v21 }
 0x192   :  { %v361_v23 = vpop.f32.mrf.mxu1 }
 0x193   :  { %v224_v25 = vadd.f32 %v361_v23, %v132_v22 }
 0x194   :  { %v214_v26 = vpop.f32.mrf.mxu1 }
 0x195   :  { %226 = vst.msk [vmem:[#allocation2 + $0x8] sm:$0xff] %vm31_vm0, %v224_v25  ;;  %v223_v27 = vadd.f32 %v214_v26, %v131_v24 }
 0x197   :  { %225 = vst.msk [vmem:[#allocation2] sm:$0xff] %vm31_vm0, %v223_v27 }
 0x19c   :  { %v231_v29 = vld [vmem:[#allocation2 + $0x8] sm:$0xff] }
 0x19d   :  { %v240_v32 = vadd.f32 %v313_v28, %v231_v29 }
 0x19e   :  { %v230_v30 = vld [vmem:[#allocation2] sm:$0xff] }
 0x19f   :  { %v239_v31 = vadd.f32 %v313_v28, %v230_v30  ;;  %v244_v35 = vadd.f32 %v240_v32, %v35_v8 }
 0x1a1   :  { %v243_v33 = vadd.f32 %v239_v31, %v445_v2  ;;  %v248_v36 = vsel %vm31_vm0, %v244_v35, 0.0 }
 0x1a3   :  { %v245_v34 = vsel %vm31_vm0, %v243_v33, 0.0 }
 0x1a4   :  { %246 = vadd.xlane.f32.xlu0 %v245_v34 }
 0x1a8   :  { %249 = vadd.xlane.f32.xlu0 %v248_v36 }
 0x22d   :  { %v247_v37 = vpop.xlane.xlu0 %246 }
 0x22e   :  { %v252_v38 = vmul.f32 0.03125, %v247_v37 }
 0x230   :  { %v254_v39 = vsub.f32 %v243_v33, %v252_v38 }
 0x231   :  { %v250_v40 = vpop.xlane.xlu0 %249 }
 0x232   :  { %v253_v41 = vmul.f32 0.03125, %v250_v40  ;;  %v256_v42 = vmul.f32 %v254_v39, %v254_v39 }
 0x234   :  { %v255_v43 = vsub.f32 %v244_v35, %v253_v41  ;;  %v258_v44 = vsel %vm31_vm0, %v256_v42, 0.0 }
 0x235   :  { %259 = vadd.xlane.f32.xlu1 %v258_v44 }
 0x236   :  { %v257_v45 = vmul.f32 %v255_v43, %v255_v43 }
 0x238   :  { %v261_v46 = vsel %vm31_vm0, %v257_v45, 0.0 }
 0x239   :  { %262 = vadd.xlane.f32.xlu1 %v261_v46 }
 0x2be   :  { %v260_v47 = vpop.xlane.xlu1 %259 }
 0x2bf   :  { %v264_v48 = vmul.f32 0.03125, %v260_v47 }
 0x2c1   :  { %v266_v49 = vadd.f32 1e-05, %v264_v48 }
 0x2c2   :  { %v263_v50 = vpop.xlane.xlu1 %262 }
 0x2c3   :  { %366 = vrsqrt.f32 %v266_v49  ;;  %v265_v51 = vmul.f32 0.03125, %v263_v50 }
 0x2c5   :  { %v267_v52 = vadd.f32 1e-05, %v265_v51 }
 0x2c7   :  { %368 = vrsqrt.f32 %v267_v52 }
 0x2d0   :  { %v367_v53 = vpop.eup %366 }
 0x2d1   :  { %v270_v55 = vmul.f32 %v367_v53, %v254_v39 }
 0x2d3   :  { %v279_v57 = vmul.f32 %v314_v54, %v270_v55 }
 0x2d4   :  { %v369_v58 = vpop.eup %368 }
 0x2d5   :  { %v271_v59 = vmul.f32 %v369_v58, %v255_v43  ;;  %v288_v60 = vadd.f32 %v315_v56, %v279_v57 }
 0x2d7   :  { %v280_v61 = vmul.f32 %v314_v54, %v271_v59  ;;  %290 = vst.msk [vmem:[#allocation3] sm:$0xff] %vm31_vm0, %v288_v60 }
 0x2d9   :  { %v289_v62 = vadd.f32 %v315_v56, %v280_v61 }
 0x2db   :  { %291 = vst.msk [vmem:[#allocation3 + $0x8] sm:$0xff] %vm31_vm0, %v289_v62 }
 0x2dc   :  { %381 = shalt.err (!%p378_p4)
}
 0x2dd   :  { %s394_s5 = smov 128   ;;  %s395_s6 = smov 8  }
 0x2de   :  { %303 = dma.vmem_to_hbm [thread:$0]  %s298_s10, 256, %s516_s7, [#allocation4], %s394_s5, %s394_s5, %s395_s6  }
 0x2df   :  { %390 = dma.done.wait [#allocation4], 256  }
 0x2e0   :  { %391 = vsyncadd [#allocation4], 4294967040 }
 0x2e1   :  { %307 = vsyncpa [#allocation4], 1 }

// kernel: decoder_layer.4
= control target key start
LH: loop header
LB: loop body
LE: loop exit
PB: predicated region body
PF: predicated region fallthrough
CT: control target
= control target key end

     0   :  { %15 = vsyncpa [#allocation3], 0  ;;  %s639_s0 = inlined_call_operand.vmem [shape: f32[16,32], index: 0, kind: input, shape index: {}]   ;;  %s640_s1 = inlined_call_operand.hbm [shape: f32[32,32], index: 1, kind: input, shape index: {}]   ;;  %s641_s2 = inlined_call_operand.vmem [shape: f32[1,32], index: 2, kind: input, shape index: {}]   ;;  %s642_s3 = inlined_call_operand.hbm [shape: f32[32,32], index: 3, kind: input, shape index: {}]   ;;  %s643_s4 = inlined_call_operand.hbm [shape: f32[1,32], index: 4, kind: input, shape index: {}]   ;;  %s644_s5 = inlined_call_operand.vmem [shape: f32[32,32], index: 5, kind: input, shape index: {}]   ;;  %s645_s6 = inlined_call_operand.hbm [shape: f32[1,32], index: 6, kind: input, shape index: {}]   ;;  %s646_s7 = inlined_call_operand.vmem [shape: f32[16,32], index: 7, kind: output, shape index: {0}]   ;;  %s647_s8 = inlined_call_operand.vmem [shape: f32[16,32], index: 8, kind: output, shape index: {1}]   ;;  %s648_s9 = inlined_call_operand.vmem [shape: f32[16,32], index: 9, kind: output, shape index: {2}]  }
   0x1   :  { %16 = vsyncpa [#allocation5], 0 }
   0x2   :  { %17 = vsyncpa [#allocation8], 0  ;;  %s520_s30 = smov [#allocation4]   ;;  %s521_s11 = smov [#allocation2]  }
   0x3   :  { %s39_s10 = sshll.u32 %s520_s30, 4  ;;  %s25_s12 = sshll.u32 %s521_s11, 4  ;;  %s40_s10 = int_to_ptr.vmem [resolvable:$true] %s39_s10  ;;  %s26_s12 = int_to_ptr.vmem [resolvable:$true] %s25_s12 }
   0x4   :  { %s442_s13 = scalar_lea.vmem %s40_s10, 512  ;;  %p447_p1 = scmp.lt.s32.totalorder %s40_s10, %s40_s10 }
   0x5   :  { %p443_p0 = scmp.ne.s32.totalorder %s40_s10, %s442_s13  ;;  %p448_p2 = scmp.lt.s32.totalorder %s442_s13, %s442_s13 }
   0x7   :  { %p449_p3 = por %p448_p2, %p447_p1 }
   0x9   :  { %p450_p4 = pnand %p449_p3, %p443_p0 }
   0xb   :  { %453 = shalt.err (!%p450_p4)
}
   0xc   :  { %s522_s14 = smov 128   ;;  %s523_s15 = smov 8  }
   0xd   :  { %45 = dma.hbm_to_vmem [thread:$0]  %s642_s3, 512, %s40_s10, [#allocation5], %s522_s14, %s522_s14, %s523_s15  }
   0xe   :  { %s462_s18 = scalar_lea.vmem %s26_s12, 512  ;;  %p467_p6 = scmp.lt.s32.totalorder %s26_s12, %s26_s12 }
   0xf   :  { %p463_p5 = scmp.ne.s32.totalorder %s26_s12, %s462_s18  ;;  %p468_p7 = scmp.lt.s32.totalorder %s462_s18, %s462_s18 }
  0x11   :  { %p469_p8 = por %p468_p7, %p467_p6 }
  0x13   :  { %p470_p9 = pnand %p469_p8, %p463_p5 }
  0x15   :  { %473 = shalt.err (!%p470_p9)
}
  0x16   :  { %31 = dma.hbm_to_vmem [thread:$0]  %s640_s1, 512, %s26_s12, [#allocation3], %s522_s14, %s522_s14, %s523_s15  }
  0x17   :  { %s524_s21 = smov [#allocation6]   ;;  %s525_s23 = smov [#allocation7]  }
  0x18   :  { %s52_s22 = sshll.u32 %s524_s21, 4  ;;  %s64_s24 = sshll.u32 %s525_s23, 4  ;;  %s53_s22 = int_to_ptr.vmem [resolvable:$true] %s52_s22  ;;  %s65_s24 = int_to_ptr.vmem [resolvable:$true] %s64_s24 }
  0x19   :  { %s482_s25 = scalar_lea.vmem %s53_s22, 16  ;;  %s486_s3 = scalar_lea.vmem %s53_s22, 32 }
  0x1a   :  { %p483_p10 = scmp.ne.s32.totalorder %s53_s22, %s482_s25  ;;  %p487_p11 = scmp.lt.s32.totalorder %s53_s22, %s53_s22 }
  0x1b   :  { %p488_p12 = scmp.lt.s32.totalorder %s486_s3, %s482_s25 }
  0x1d   :  { %p489_p13 = por %p488_p12, %p487_p11 }
  0x1f   :  { %p490_p0 = pnand %p489_p13, %p483_p10 }
  0x21   :  { %493 = shalt.err (!%p490_p0)
}
  0x22   :  { %55 = dma.hbm_to_vmem [thread:$0]  %s643_s4, 16, %s53_s22, [#allocation5]  }
  0x23   :  { %s502_s28 = scalar_lea.vmem %s65_s24, 16  ;;  %s506_s1 = scalar_lea.vmem %s65_s24, 32 }
  0x24   :  { %p503_p1 = scmp.ne.s32.totalorder %s65_s24, %s502_s28  ;;  %p507_p2 = scmp.lt.s32.totalorder %s65_s24, %s65_s24 }
  0x25   :  { %p508_p3 = scmp.lt.s32.totalorder %s506_s1, %s502_s28 }
  0x27   :  { %p509_p4 = por %p508_p3, %p507_p2 }
  0x29   :  { %p510_p5 = pnand %p509_p4, %p503_p1 }
  0x2b   :  { %513 = shalt.err (!%p510_p5)
}
  0x2c   :  { %67 = dma.hbm_to_vmem [thread:$0]  %s645_s6, 16, %s65_s24, [#allocation8]  }
  0x2d   :  { %514 = dma.done.wait [#allocation3], 512  }
  0x2e   :  { %515 = vsyncadd [#allocation3], 4294966784 }
  0x2f   :  { %516 = dma.done.wait [#allocation5], 528  }
  0x30   :  { %517 = vsyncadd [#allocation5], 4294966768 }
  0x31   :  { %518 = dma.done.wait [#allocation8], 16  }
  0x32   :  { %519 = vsyncadd [#allocation8], 4294967280  ;;  %v85_v0 = vld [vmem:[#allocation2 + $0x18] sm:$0xff]  ;;  %v84_v1 = vld [vmem:[#allocation2 + $0x10] sm:$0xff]  ;;  %vm93_vm0 = vcmask 261120  }
  0x33   :  { %395 = vmatprep.subr.mxu0 %v85_v0  ;;  %v180_v2 = vld [vmem:[#allocation4 + $0x18] sm:$0xff]  ;;  %v80_v3 = vld [vmem:[%s639_s0] sm:$0xff]  ;;  %v83_v4 = vld [vmem:[#allocation2 + $0x8] sm:$0xff] }
  0x34   :  { %396 = vmatpush3.msra.mxu0 %v85_v0  ;;  %406 = vmatprep.subr.mxu1 %v180_v2  ;;  %v179_v5 = vld [vmem:[#allocation4 + $0x10] sm:$0xff]  ;;  %v82_v6 = vld [vmem:[#allocation2] sm:$0xff]  ;;  %v178_v7 = vld [vmem:[#allocation4 + $0x8] sm:$0xff] }
  0x35   :  { %397 = vmatprep.subr.mxu0 %v84_v1  ;;  %403 = vmatprep.mubr.msk.f32.mxu0 %vm93_vm0, %v80_v3  ;;  %v81_v8 = vld [vmem:[%s639_s0 + $0x8] sm:$0xff]  ;;  %v268_v9 = vld [vmem:[%s644_s5 + $0x18] sm:$0xff]  ;;  %v177_v10 = vld [vmem:[#allocation4] sm:$0xff] }
  0x36   :  { %398 = vmatpush3.msra.mxu0 %v84_v1  ;;  %407 = vmatpush3.msra.mxu1 %v180_v2  ;;  %v267_v11 = vld [vmem:[%s644_s5 + $0x10] sm:$0xff]  ;;  %v266_v12 = vld [vmem:[%s644_s5 + $0x8] sm:$0xff]  ;;  %v265_v13 = vld [vmem:[%s644_s5] sm:$0xff] }
  0x37   :  { %399 = vmatprep.subr.mxu0 %v83_v4  ;;  %408 = vmatprep.subr.mxu1 %v179_v5  ;;  %v368_v14 = vld [vmem:[%s641_s2] ss:$0 sm:$0xff]  ;;  %v374_v23 = vld [vmem:[#allocation7] ss:$0 sm:$0xff] }
  0x38   :  { %400 = vmatpush3.msra.mxu0 %v83_v4  ;;  %409 = vmatpush3.msra.mxu1 %v179_v5  ;;  %v371_v18 = vld [vmem:[#allocation6] ss:$0 sm:$0xff] }
  0x39   :  { %401 = vmatprep.subr.mxu0 %v82_v6  ;;  %410 = vmatprep.subr.mxu1 %v178_v7 }
  0x3a   :  { %402 = vmatpush3.msra.mxu0 %v82_v6  ;;  %411 = vmatpush3.msra.mxu1 %v178_v7 }
  0x3b   :  { %404 = vmatmul.mubr.msk.f32.vlgmr.msra.gmra.mxu0 %vm93_vm0, %v81_v8  ;;  %417 = vmatprep.subr.mxu0 %v268_v9 }
  0x3c   :  { %418 = vmatpush3.msra.mxu0 %v268_v9  ;;  %412 = vmatprep.subr.mxu1 %v177_v10 }
  0x3d   :  { %419 = vmatprep.subr.mxu0 %v267_v11  ;;  %413 = vmatpush3.msra.mxu1 %v177_v10 }
  0x3e   :  { %420 = vmatpush3.msra.mxu0 %v267_v11  ;;  %414 = vmatprep.mubr.msk.f32.mxu1 %vm93_vm0, %v80_v3 }
  0x3f   :  { %421 = vmatprep.subr.mxu0 %v266_v12  ;;  %415 = vmatmul.mubr.msk.f32.vlgmr.msra.gmra.mxu1 %vm93_vm0, %v81_v8 }
  0x40   :  { %422 = vmatpush3.msra.mxu0 %v266_v12  ;;  %425 = vmatprep.mubr.msk.f32.mxu0 %vm93_vm0, %v80_v3 }
  0x41   :  { %423 = vmatprep.subr.mxu0 %v265_v13 }
  0x42   :  { %424 = vmatpush3.msra.mxu0 %v265_v13 }
  0x43   :  { %426 = vmatmul.mubr.msk.f32.vlgmr.msra.gmra.mxu0 %vm93_vm0, %v81_v8 }
  0xfb   :  { %v405_v15 = vpop.f32.mrf.mxu0 }
  0xfc   :  { %v172_v16 = vadd.f32 %v405_v15, %v368_v14 }
  0xfd   :  { %v166_v17 = vpop.f32.mrf.mxu0 }
  0xfe   :  { %176 = vst.msk [vmem:[%s646_s7 + $0x8] sm:$0xff] %vm93_vm0, %v172_v16  ;;  %v167_v19 = vadd.f32 %v368_v14, %v166_v17 }
  0xff   :  { %v416_v20 = vpop.f32.mrf.mxu1 }
 0x100   :  { %175 = vst.msk [vmem:[%s646_s7] sm:$0xff] %vm93_vm0, %v167_v19  ;;  %v260_v21 = vadd.f32 %v416_v20, %v371_v18 }
 0x101   :  { %v254_v22 = vpop.f32.mrf.mxu1 }
 0x102   :  { %264 = vst.msk [vmem:[%s647_s8 + $0x8] sm:$0xff] %vm93_vm0, %v260_v21  ;;  %v255_v24 = vadd.f32 %v371_v18, %v254_v22 }
 0x103   :  { %v427_v25 = vpop.f32.mrf.mxu0 }
 0x104   :  { %263 = vst.msk [vmem:[%s647_s8] sm:$0xff] %vm93_vm0, %v255_v24  ;;  %v348_v26 = vadd.f32 %v427_v25, %v374_v23 }
 0x105   :  { %v342_v27 = vpop.f32.mrf.mxu0 }
 0x106   :  { %352 = vst.msk [vmem:[%s648_s9 + $0x8] sm:$0xff] %vm93_vm0, %v348_v26  ;;  %v343_v28 = vadd.f32 %v374_v23, %v342_v27 }
 0x108   :  { %351 = vst.msk [vmem:[%s648_s9] sm:$0xff] %vm93_vm0, %v343_v28 }
 0x109   :  { %365 = vsyncpa [#allocation3], 1 }
 0x10a   :  { %366 = vsyncpa [#allocation5], 1 }
 0x10b   :  { %367 = vsyncpa [#allocation8], 1 }

// kernel: decoder_layer.6
= control target key start
LH: loop header
LB: loop body
LE: loop exit
PB: predicated region body
PF: predicated region fallthrough
CT: control target
= control target key end

     0   :  { %vm27_vm0 = vcmask 261120   ;;  %v220_v2 = vmov 0.0   ;;  %s307_s1 = inlined_call_operand.vmem [shape: f32[32,32], index: 1, kind: input, shape index: {}]   ;;  %s308_s0 = inlined_call_operand.vmem [shape: f32[16,32], index: 0, kind: input, shape index: {}]   ;;  %s309_s2 = inlined_call_operand.vmem [shape: f32[1,32], index: 2, kind: input, shape index: {}]   ;;  %s310_s3 = inlined_call_operand.vmem [shape: f32[16,32], index: 3, kind: input, shape index: {}]   ;;  %s311_s4 = inlined_call_operand.vmem [shape: f32[1,32], index: 4, kind: input, shape index: {}]   ;;  %s312_s5 = inlined_call_operand.vmem [shape: f32[1,32], index: 5, kind: input, shape index: {}]   ;;  %s313_s6 = inlined_call_operand.vmem [shape: f32[16,32], index: 6, kind: output, shape index: {}]  }
   0x1   :  { %v37_v0 = vld [vmem:[%s307_s1 + $0x18] sm:$0xff]  ;;  %v36_v1 = vld [vmem:[%s307_s1 + $0x10] sm:$0xff]  ;;  %29 = vst.msk [vmem:[#allocation2 + $0x8] sm:$0xff] %vm27_vm0, %v220_v2  ;;  %28 = vst.msk [vmem:[#allocation2] sm:$0xff] %vm27_vm0, %v220_v2 }
   0x2   :  { %204 = vmatprep.subr.mxu0 %v37_v0  ;;  %v32_v3 = vld [vmem:[%s308_s0] sm:$0xff]  ;;  %v35_v4 = vld [vmem:[%s307_s1 + $0x8] sm:$0xff] }
   0x3   :  { %205 = vmatpush3.msra.mxu0 %v37_v0  ;;  %212 = vmatprep.mubr.msk.f32.mxu0 %vm27_vm0, %v32_v3  ;;  %v34_v5 = vld [vmem:[%s307_s1] sm:$0xff]  ;;  %v33_v6 = vld [vmem:[%s308_s0 + $0x8] sm:$0xff] }
   0x4   :  { %206 = vmatprep.subr.mxu0 %v36_v1  ;;  %v195_v13 = vld [vmem:[%s309_s2] ss:$0 sm:$0xff]  ;;  %v139_v19 = vld [vmem:[%s310_s3 + $0x8] sm:$0xff] }
   0x5   :  { %207 = vmatpush3.msra.mxu0 %v36_v1  ;;  %v138_v16 = vld [vmem:[%s310_s3] sm:$0xff] }
   0x6   :  { %208 = vmatprep.subr.mxu0 %v35_v4  ;;  %v196_v41 = vld [vmem:[%s311_s4] ss:$0 sm:$0xff] }
   0x7   :  { %209 = vmatpush3.msra.mxu0 %v35_v4  ;;  %v197_v43 = vld [vmem:[%s312_s5] ss:$0 sm:$0xff] }
   0x8   :  { %210 = vmatprep.subr.mxu0 %v34_v5  ;;  %v31_v7 = vld [vmem:[#allocation2 + $0x8] sm:$0xff]  ;;  %v30_v9 = vld [vmem:[#allocation2] sm:$0xff] }
   0x9   :  { %211 = vmatpush3.msra.mxu0 %v34_v5 }
   0xa   :  { %213 = vmatmul.mubr.msk.f32.vlgmr.msra.gmra.mxu0 %vm27_vm0, %v33_v6 }
  0xca   :  { %v214_v8 = vpop.f32.mrf.mxu0 }
  0xcb   :  { %v121_v10 = vadd.f32 %v214_v8, %v31_v7 }
  0xcc   :  { %v111_v11 = vpop.f32.mrf.mxu0 }
  0xcd   :  { %123 = vst.msk [vmem:[#allocation2 + $0x8] sm:$0xff] %vm27_vm0, %v121_v10  ;;  %v120_v12 = vadd.f32 %v111_v11, %v30_v9 }
  0xcf   :  { %122 = vst.msk [vmem:[#allocation2] sm:$0xff] %vm27_vm0, %v120_v12 }
  0xd4   :  { %v128_v14 = vld [vmem:[#allocation2 + $0x8] sm:$0xff] }
  0xd5   :  { %v137_v18 = vadd.f32 %v195_v13, %v128_v14 }
  0xd6   :  { %v127_v15 = vld [vmem:[#allocation2] sm:$0xff] }
  0xd7   :  { %v136_v17 = vadd.f32 %v195_v13, %v127_v15  ;;  %v141_v22 = vadd.f32 %v139_v19, %v137_v18 }
  0xd9   :  { %v140_v20 = vadd.f32 %v138_v16, %v136_v17  ;;  %v145_v23 = vsel %vm27_vm0, %v141_v22, 0.0 }
  0xdb   :  { %v142_v21 = vsel %vm27_vm0, %v140_v20, 0.0 }
  0xdc   :  { %143 = vadd.xlane.f32.xlu0 %v142_v21 }
  0xe0   :  { %146 = vadd.xlane.f32.xlu0 %v145_v23 }
 0x165   :  { %v144_v24 = vpop.xlane.xlu0 %143 }
 0x166   :  { %v149_v25 = vmul.f32 0.03125, %v144_v24 }
 0x168   :  { %v151_v26 = vsub.f32 %v140_v20, %v149_v25 }
 0x169   :  { %v147_v27 = vpop.xlane.xlu0 %146 }
 0x16a   :  { %v150_v28 = vmul.f32 0.03125, %v147_v27  ;;  %v153_v29 = vmul.f32 %v151_v26, %v151_v26 }
 0x16c   :  { %v152_v30 = vsub.f32 %v141_v22, %v150_v28  ;;  %v155_v31 = vsel %vm27_vm0, %v153_v29, 0.0 }
 0x16d   :  { %156 = vadd.xlane.f32.xlu1 %v155_v31 }
 0x16e   :  { %v154_v32 = vmul.f32 %v152_v30, %v152_v30 }
 0x170   :  { %v158_v33 = vsel %vm27_vm0, %v154_v32, 0.0 }
 0x171   :  { %159 = vadd.xlane.f32.xlu1 %v158_v33 }
 0x1f6   :  { %v157_v34 = vpop.xlane.xlu1 %156 }
 0x1f7   :  { %v161_v35 = vmul.f32 0.03125, %v157_v34 }
 0x1f9   :  { %v163_v36 = vadd.f32 1e-05, %v161_v35 }
 0x1fa   :  { %v160_v37 = vpop.xlane.xlu1 %159 }
 0x1fb   :  { %216 = vrsqrt.f32 %v163_v36  ;;  %v162_v38 = vmul.f32 0.03125, %v160_v37 }
 0x1fd   :  { %v164_v39 = vadd.f32 1e-05, %v162_v38 }
 0x1ff   :  { %218 = vrsqrt.f32 %v164_v39 }
 0x208   :  { %v217_v40 = vpop.eup %216 }
 0x209   :  { %v167_v42 = vmul.f32 %v217_v40, %v151_v26 }
 0x20b   :  { %v176_v44 = vmul.f32 %v196_v41, %v167_v42 }
 0x20c   :  { %v219_v45 = vpop.eup %218 }
 0x20d   :  { %v185_v46 = vadd.f32 %v197_v43, %v176_v44  ;;  %v168_v47 = vmul.f32 %v219_v45, %v152_v30 }
 0x20f   :  { %187 = vst.msk [vmem:[%s313_s6] sm:$0xff] %vm27_vm0, %v185_v46  ;;  %v177_v48 = vmul.f32 %v196_v41, %v168_v47 }
 0x211   :  { %v186_v49 = vadd.f32 %v197_v43, %v177_v48 }
 0x213   :  { %188 = vst.msk [vmem:[%s313_s6 + $0x8] sm:$0xff] %vm27_vm0, %v186_v49 }

// kernel: decoder_layer.5
= control target key start
LH: loop header
LB: loop body
LE: loop exit
PB: predicated region body
PF: predicated region fallthrough
CT: control target
= control target key end

     0   :  { %s1398_s12 = smov 0   ;;  %s1400_s13 = smov 0   ;;  %s1544_s0 = inlined_call_operand.vmem [shape: f32[2,8,32], index: 0, kind: input, shape index: {}]   ;;  %s1545_s1 = inlined_call_operand.vmem [shape: f32[2,8,32], index: 1, kind: input, shape index: {}]   ;;  %s1546_s2 = inlined_call_operand.vmem [shape: f32[2,8,32], index: 2, kind: input, shape index: {}]   ;;  %s1547_s3 = inlined_call_operand.vmem [shape: f32[2,8,32], index: 3, kind: output, shape index: {}]  }
   0x1   :  { %s1402_s14 = smov 0  }
   0x2 LB: > { %s32_s15 = sadd.s32 1, %s1362_s13  ;;  %p1209_p0 = scmp.ge.s32.totalorder %s1366_s14, 1  ;;  %s1366_s14 = sphi %s1402_s14, %s13_s14   ;;  %s1362_s13 = sphi %s1400_s13, %s1549_s13   ;;  %s1358_s12 = sphi %s1398_s12, %s1548_s12  }
   0x3   : > { %p34_p1 = scmp.ge.s32.totalorder %s32_s15, 2  ;;  %p190_p2 = scmp.lt.s32.totalorder %s1366_s14, 3 }
   0x5   : > { %s1551_s15 = smov (%p34_p1, %s32_s15), 0  ;;  %p191_p3 = pnand %p1209_p0, %p190_p2 }
   0x6   : > { %p232_p4 = scmp.lt.s32.totalorder (!%p191_p3), %s1358_s12, 1  ;;  %s1372_s23 = smov (!%p191_p3), 120  }
   0x7   : > { %194 = sbr.rel (%p191_p3) target bundleno = 1393 (0x571), region = 32  ;;  %s1373_s24 = smov (!%p191_p3), 112  }
   0x8   : > { %s1374_s25 = smov (!%p191_p3), 104   ;;  %s1375_s29 = smov (!%p191_p3), 8  }
   0x9   : > { %s1376_s30 = smov (!%p191_p3), 16   ;;  %s1377_s4 = smov (!%p191_p3), 24  }
   0xc   : > { %vm273_vm0 = vcmask 64512   ;;  %v1368_v0 = vmov 0.0   ;;  %vm1369_vm1 = vmmov 0   ;;  %s1553_s12 = smov (!%p232_p4, %s1358_s12), 1  ;;  %vm264_vm2 = vcmask 7168  }
   0xd   : > { %1244 = vmatprep.subr.mxu0 %v1368_v0  ;;  %274 = vst.msk [vmem:[#allocation4] sm:$0xff] %vm273_vm0, %v1368_v0  ;;  %275 = vst.msk [vmem:[#allocation4 + $0x8] sm:$0xff] %vm273_vm0, %v1368_v0  ;;  %1246 = vmatprep.mubr.msk.f32.mxu0 %vm1369_vm1, %v1368_v0  ;;  %s1430_s16 = sshll.u32 %s1553_s12, 3  ;;  %v1370_v3 = vmov -inf   ;;  %v1371_v8 = vmov 0   ;;  %vm1092_vm3 = vcmask 130048  }
   0xe   : > { %276 = vst.msk [vmem:[#allocation4 + $0x10] sm:$0xff] %vm273_vm0, %v1368_v0  ;;  %277 = vst.msk [vmem:[#allocation4 + $0x18] sm:$0xff] %vm273_vm0, %v1368_v0  ;;  %1249 = vmatprep.subr.mxu1 %v1368_v0  ;;  %1251 = vmatprep.mubr.msk.f32.mxu1 %vm1369_vm1, %v1368_v0  ;;  %s245_s19 = scalar_lea.vmem %s1545_s1, %s1430_s16  ;;  %s238_s22 = scalar_lea.vmem %s1544_s0, %s1430_s16  ;;  %vm1094_vm4 = vcmask 195584   ;;  %vm1096_vm5 = vcmask 261120  }
   0xf   : > { %v279_v1 = vld [vmem:[%s245_s19] sm:$0xff]  ;;  %265 = vst.msk [vmem:[#allocation2] sm:$0xff] %vm264_vm2, %v1370_v3  ;;  %266 = vst.msk [vmem:[#allocation2 + $0x8] sm:$0xff] %vm264_vm2, %v1370_v3  ;;  %1318 = vset.pattern.permute.xlu0 %v1371_v8  ;;  %1319 = vset.pattern.permute.xlu1 %v1371_v8  ;;  %s252_s28 = scalar_lea.vmem %s1546_s2, %s1430_s16  ;;  %s259_s7 = scalar_lea.vmem %s1547_s3, %s1430_s16 }
  0x10   : > { %1245 = vmatpush3.xpose.msk.msra.mxu0 %vm273_vm0, %v279_v1  ;;  %v278_v2 = vld [vmem:[%s238_s22] sm:$0xff]  ;;  %267 = vst.msk [vmem:[#allocation2 + $0x10] sm:$0xff] %vm264_vm2, %v1370_v3  ;;  %268 = vst.msk [vmem:[#allocation2 + $0x18] sm:$0xff] %vm264_vm2, %v1370_v3  ;;  %468 = vrot.lane.b32.xlu1 %v279_v1, %s1372_s23 }
  0x11   : > { %1259 = vmatprep.subr.mxu0 %v1368_v0  ;;  %269 = vst.msk [vmem:[#allocation3] sm:$0xff] %vm264_vm2, %v1368_v0  ;;  %270 = vst.msk [vmem:[#allocation3 + $0x8] sm:$0xff] %vm264_vm2, %v1368_v0  ;;  %v280_v13 = vld [vmem:[%s252_s28] sm:$0xff] }
  0x12   : > { %271 = vst.msk [vmem:[#allocation3 + $0x10] sm:$0xff] %vm264_vm2, %v1368_v0  ;;  %272 = vst.msk [vmem:[#allocation3 + $0x18] sm:$0xff] %vm264_vm2, %v1368_v0  ;;  %1250 = vmatpush3.msra.mxu1 %v280_v13 }
  0x13   : > { %1247 = vmatmul.mubr.msk.f32.vlgmr.msra.gmra.mxu0 %vm273_vm0, %v278_v2  ;;  %1254 = vmatprep.subr.mxu1 %v1368_v0 }
  0x14   : > { %1261 = vmatprep.mubr.msk.f32.mxu0 %vm1369_vm1, %v1368_v0  ;;  %466 = vrot.lane.b32.xlu1 %v278_v2, %s1372_s23 }
  0x16   : > { %v1464_v9 = vld [vmem:[#allocation2] sm:$0xff]  ;;  %v546_v38 = vld [vmem:[#allocation2 + $0x8] sm:$0xff] }
  0x17   : > { %v738_v41 = vld [vmem:[#allocation2 + $0x10] sm:$0xff]  ;;  %v929_v45 = vld [vmem:[#allocation2 + $0x18] sm:$0xff] }
  0x18   : > { %660 = vrot.lane.b32.xlu1 %v279_v1, %s1373_s24 }
  0x1c   : > { %658 = vrot.lane.b32.xlu1 %v278_v2, %s1373_s24 }
  0x20   : > { %851 = vrot.lane.b32.xlu1 %v279_v1, %s1374_s25 }
  0x24   : > { %849 = vrot.lane.b32.xlu1 %v278_v2, %s1374_s25 }
  0x82   : > { %v469_v14 = vpop.permute.xlu1 %468 }
  0x86   : > { %v467_v18 = vpop.permute.xlu1 %466 }
  0x8a   : > { %v661_v19 = vpop.permute.xlu1 %660 }
  0x8e   : > { %v659_v20 = vpop.permute.xlu1 %658 }
  0x92   : > { %v852_v22 = vpop.permute.xlu1 %851 }
  0x96   : > { %v850_v23 = vpop.permute.xlu1 %849 }
  0xd3   : > { %v354_v4 = vpop.f32.mrf.mxu0 }
  0xd4   : > { %v358_v5 = vmul.f32 0.35355338, %v354_v4 }
  0xd5   : > { %v1248_v6 = vpop.f32.mrf.mxu0 }
  0xd6   : > { %v360_v7 = vsel %vm273_vm0, %v358_v5, -inf }
  0xd7   : > { %361 = vmax.xlane.f32.xlu0 %v360_v7 }
 0x160   : > { %v362_v10 = vpop.xlane.xlu0 %361 }
 0x161   : > { %v1467_v11 = vmax.f32 %v1464_v9, %v362_v10 }
 0x163   : > { %v364_v12 = vsub.f32 %v1464_v9, %v1467_v11  ;;  %465 = vst.msk [vmem:[#allocation2] sm:$0xff] %vm264_vm2, %v1467_v11  ;;  %369 = vperm.xlu0 %1318, %v1467_v11   ;;  %v563_v11 = vld [vmem:[#allocation3 + $0x8] sm:$0xff] }
 0x165   : > { %v365_v8 = vmul.f32 1.442695, %v364_v12 }
 0x1de   : > { %v370_v15 = vpop.permute.xlu0 %369 }
 0x1df   : > { %v372_v16 = vsub.f32 %v358_v5, %v370_v15 }
 0x1e1   : > { %v373_v17 = vmul.f32 1.442695, %v372_v16  ;;  %v375_v16 = vld [vmem:[#allocation3] sm:$0xff] }
 0x1e3   : > { %1320 = vpow2.f32 %v373_v17 }
 0x1f0   : > { %v1321_v21 = vpop.eup %1320 }
 0x1f1   : > { %1252 = vmatmul.mubr.msk.f32.vlgmr.msra.gmra.mxu1 %vm273_vm0, %v1321_v21  ;;  %v377_v50 = vsel %vm273_vm0, %v1321_v21, 0.0 }
 0x1f2   : > { %1255 = vmatpush3.xpose.msk.msra.mxu1 %vm273_vm0, %v469_v14  ;;  %1256 = vmatprep.mubr.msk.f32.mxu1 %vm1369_vm1, %v1368_v0 }
 0x1f3   : > { %1264 = vmatprep.subr.mxu1 %v1368_v0 }
 0x1f5   : > { %1257 = vmatmul.mubr.msk.f32.vlgmr.msra.gmra.mxu1 %vm273_vm0, %v467_v18 }
 0x1f6   : > { %1265 = vmatpush3.xpose.msk.msra.mxu1 %vm273_vm0, %v661_v19  ;;  %1266 = vmatprep.mubr.msk.f32.mxu1 %vm1369_vm1, %v1368_v0 }
 0x1f7   : > { %1274 = vmatprep.subr.mxu1 %v1368_v0 }
 0x1f9   : > { %1267 = vmatmul.mubr.msk.f32.vlgmr.msra.gmra.mxu1 %vm273_vm0, %v659_v20 }
 0x1fa   : > { %1275 = vmatpush3.xpose.msk.msra.mxu1 %vm273_vm0, %v852_v22  ;;  %1276 = vmatprep.mubr.msk.f32.mxu1 %vm1369_vm1, %v1368_v0  ;;  %v755_v22 = vld [vmem:[#allocation3 + $0x10] sm:$0xff] }
 0x1fd   : > { %1277 = vmatmul.mubr.msk.f32.vlgmr.msra.gmra.mxu1 %vm273_vm0, %v850_v23 }
 0x2b1   : > { %v1494_v24 = vpop.f32.mrf.mxu1 }
 0x2b3   : > { %v1253_v25 = vpop.f32.mrf.mxu1 }
 0x2b5   : > { %v540_v26 = vpop.f32.mrf.mxu1 }
 0x2b6   : > { %v544_v27 = vmul.f32 0.35355338, %v540_v26 }
 0x2b7   : > { %v1258_v28 = vpop.f32.mrf.mxu1 }
 0x2b8   : > { %v547_v29 = vsel %vm273_vm0, %v544_v27, -inf }
 0x2b9   : > { %548 = vmax.xlane.f32.xlu1 %v547_v29  ;;  %v732_v30 = vpop.f32.mrf.mxu1 }
 0x2ba   : > { %v736_v31 = vmul.f32 0.35355338, %v732_v30 }
 0x2bb   : > { %v1268_v32 = vpop.f32.mrf.mxu1 }
 0x2bc   : > { %v739_v33 = vsel %vm273_vm0, %v736_v31, -inf }
 0x2bd   : > { %740 = vmax.xlane.f32.xlu0 %v739_v33  ;;  %v923_v34 = vpop.f32.mrf.mxu1  ;;  %v383_v33 = vld [vmem:[#allocation4] sm:$0xff] }
 0x2be   : > { %v927_v35 = vmul.f32 0.35355338, %v923_v34 }
 0x2bf   : > { %v1278_v36 = vpop.f32.mrf.mxu1 }
 0x2c0   : > { %v930_v37 = vsel %vm273_vm0, %v927_v35, -inf }
 0x2c1   : > { %931 = vmax.xlane.f32.xlu1 %v930_v37 }
 0x342   : > { %v549_v39 = vpop.xlane.xlu1 %548 }
 0x343   : > { %v550_v40 = vmax.f32 %v546_v38, %v549_v39 }
 0x345   : > { %v551_v42 = vsub.f32 %v546_v38, %v550_v40  ;;  %657 = vst.msk [vmem:[#allocation2 + $0x8] sm:$0xff] %vm264_vm2, %v550_v40  ;;  %556 = vperm.xlu1 %1319, %v550_v40  }
 0x346   : > { %v741_v43 = vpop.xlane.xlu0 %740 }
 0x347   : > { %v742_v44 = vmax.f32 %v738_v41, %v741_v43  ;;  %v552_v3 = vmul.f32 1.442695, %v551_v42  ;;  %v571_v42 = vld [vmem:[#allocation4 + $0x8] sm:$0xff] }
 0x349   : > { %v743_v46 = vsub.f32 %v738_v41, %v742_v44  ;;  %848 = vst.msk [vmem:[#allocation2 + $0x10] sm:$0xff] %vm264_vm2, %v742_v44  ;;  %748 = vperm.xlu0 %1318, %v742_v44  }
 0x34a   : > { %v932_v47 = vpop.xlane.xlu1 %931 }
 0x34b   : > { %v933_v48 = vmax.f32 %v929_v45, %v932_v47  ;;  %v744_v10 = vmul.f32 1.442695, %v743_v46 }
 0x34d   : > { %v934_v49 = vsub.f32 %v929_v45, %v933_v48  ;;  %1039 = vst.msk [vmem:[#allocation2 + $0x18] sm:$0xff] %vm264_vm2, %v933_v48  ;;  %939 = vperm.xlu1 %1319, %v933_v48   ;;  %v763_v45 = vld [vmem:[#allocation4 + $0x10] sm:$0xff] }
 0x34f   : > { %v935_v6 = vmul.f32 1.442695, %v934_v49 }
 0x351   : > { %579 = vrot.lane.b32.xlu1 %v280_v13, %s1372_s23 }
 0x355   : > { %770 = vrot.lane.b32.xlu1 %v280_v13, %s1373_s24 }
 0x359   : > { %961 = vrot.lane.b32.xlu1 %v280_v13, %s1374_s25 }
 0x37d   : > { %378 = vadd.xlane.f32.xlu1 %v377_v50 }
 0x3c0   : > { %v557_v51 = vpop.permute.xlu1 %556 }
 0x3c1   : > { %v559_v52 = vsub.f32 %v544_v27, %v557_v51  ;;  %v946_v27 = vld [vmem:[#allocation3 + $0x18] sm:$0xff] }
 0x3c3   : > { %v560_v53 = vmul.f32 1.442695, %v559_v52 }
 0x3c4   : > { %v749_v54 = vpop.permute.xlu0 %748 }
 0x3c5   : > { %1322 = vpow2.f32 %v560_v53  ;;  %v751_v55 = vsub.f32 %v736_v31, %v749_v54 }
 0x3c7   : > { %v752_v56 = vmul.f32 1.442695, %v751_v55 }
 0x3c8   : > { %v940_v57 = vpop.permute.xlu1 %939 }
 0x3c9   : > { %1324 = vpow2.f32 %v752_v56  ;;  %v942_v58 = vsub.f32 %v927_v35, %v940_v57 }
 0x3cb   : > { %v943_v59 = vmul.f32 1.442695, %v942_v58 }
 0x3cc   : > { %v580_v60 = vpop.permute.xlu1 %579 }
 0x3cd   : > { %1326 = vpow2.f32 %v943_v59  ;;  %1260 = vmatpush3.msra.mxu0 %v580_v60 }
 0x3ce   : > { %1269 = vmatprep.subr.mxu0 %v1368_v0  ;;  %1328 = vpow2.f32 %v552_v3 }
 0x3cf   : > { %1330 = vpow2.f32 %v935_v6 }
 0x3d0   : > { %v771_v61 = vpop.permute.xlu1 %770  ;;  %1332 = vpow2.f32 %v365_v8 }
 0x3d1   : > { %1334 = vpow2.f32 %v744_v10 }
 0x3d2   : > { %v1323_v62 = vpop.eup %1322 }
 0x3d3   : > { %1262 = vmatmul.mubr.msk.f32.vlgmr.msra.gmra.mxu0 %vm273_vm0, %v1323_v62  ;;  %v565_v63 = vsel %vm273_vm0, %v1323_v62, 0.0 }
 0x3d4   : > { %566 = vadd.xlane.f32.xlu0 %v565_v63  ;;  %1270 = vmatpush3.msra.mxu0 %v771_v61  ;;  %v962_v1 = vpop.permute.xlu1 %961 }
 0x3d5   : > { %1271 = vmatprep.mubr.msk.f32.mxu0 %vm1369_vm1, %v1368_v0  ;;  %1279 = vmatprep.subr.mxu0 %v1368_v0 }
 0x3d6   : > { %v1325_v2 = vpop.eup %1324 }
 0x3d7   : > { %1272 = vmatmul.mubr.msk.f32.vlgmr.msra.gmra.mxu0 %vm273_vm0, %v1325_v2  ;;  %v757_v4 = vsel %vm273_vm0, %v1325_v2, 0.0 }
 0x3d8   : > { %758 = vadd.xlane.f32.xlu1 %v757_v4  ;;  %1280 = vmatpush3.msra.mxu0 %v962_v1 }
 0x3d9   : > { %1281 = vmatprep.mubr.msk.f32.mxu0 %vm1369_vm1, %v1368_v0 }
 0x3da   : > { %v1327_v5 = vpop.eup %1326 }
 0x3db   : > { %1282 = vmatmul.mubr.msk.f32.vlgmr.msra.gmra.mxu0 %vm273_vm0, %v1327_v5  ;;  %v948_v7 = vsel %vm273_vm0, %v1327_v5, 0.0  ;;  %v1329_v13 = vpop.eup %1328 }
 0x3dc   : > { %949 = vadd.xlane.f32.xlu0 %v948_v7  ;;  %v1331_v14 = vpop.eup %1330  ;;  %v564_v12 = vmul.f32 %v1329_v13, %v563_v11 }
 0x3dd   : > { %v1333_v0 = vpop.eup %1332  ;;  %v947_v29 = vmul.f32 %v1331_v14, %v946_v27 }
 0x3de   : > { %v1335_v15 = vpop.eup %1334  ;;  %v376_v17 = vmul.f32 %v1333_v0, %v375_v16 }
 0x3df   : > { %v756_v25 = vmul.f32 %v1335_v15, %v755_v22 }
 0x3e9   : > { %574 = vperm.xlu1 %1319, %v1329_v13  }
 0x3ed   : > { %957 = vperm.xlu1 %1319, %v1331_v14  }
 0x3f2   : > { %386 = vperm.xlu0 %1318, %v1333_v0  }
 0x3f6   : > { %766 = vperm.xlu0 %1318, %v1335_v15  }
 0x406   : > { %v379_v18 = vpop.xlane.xlu1 %378 }
 0x407   : > { %v380_v19 = vadd.f32 %v379_v18, %v376_v17 }
 0x409   : > { %382 = vst.msk [vmem:[#allocation3] sm:$0xff] %vm264_vm2, %v380_v19 }
 0x410   : > { %v1044_v20 = vld [vmem:[#allocation3] sm:$0xff] }
 0x411   : > { %1336 = vrcp.f32 %v1044_v20 }
 0x41e   : > { %v1337_v9 = vpop.eup %1336 }
 0x41f   : > { %1048 = vperm.xlu1 %1319, %v1337_v9  }
 0x45d   : > { %v567_v21 = vpop.xlane.xlu0 %566 }
 0x45e   : > { %v568_v23 = vadd.f32 %v567_v21, %v564_v12 }
 0x460   : > { %569 = vst.msk [vmem:[#allocation3 + $0x8] sm:$0xff] %vm264_vm2, %v568_v23 }
 0x461   : > { %v759_v26 = vpop.xlane.xlu1 %758 }
 0x462   : > { %v760_v28 = vadd.f32 %v759_v26, %v756_v25 }
 0x464   : > { %761 = vst.msk [vmem:[#allocation3 + $0x10] sm:$0xff] %vm264_vm2, %v760_v28 }
 0x465   : > { %v950_v30 = vpop.xlane.xlu0 %949  ;;  %v575_v43 = vpop.permute.xlu1 %574 }
 0x466   : > { %v951_v31 = vadd.f32 %v950_v30, %v947_v29  ;;  %v577_v44 = vmul.f32 %v575_v43, %v571_v42 }
 0x467   : > { %v1053_v32 = vld [vmem:[#allocation3 + $0x8] sm:$0xff] }
 0x468   : > { %952 = vst.msk [vmem:[#allocation3 + $0x18] sm:$0xff] %vm264_vm2, %v951_v31  ;;  %1338 = vrcp.f32 %v1053_v32 }
 0x469   : > { %v958_v51 = vpop.permute.xlu1 %957 }
 0x46b   : > { %v1062_v34 = vld [vmem:[#allocation3 + $0x10] sm:$0xff] }
 0x46c   : > { %1340 = vrcp.f32 %v1062_v34 }
 0x46d   : > { %v387_v35 = vpop.permute.xlu0 %386 }
 0x46e   : > { %v389_v36 = vmul.f32 %v387_v35, %v383_v33 }
 0x46f   : > { %v1071_v37 = vld [vmem:[#allocation3 + $0x18] sm:$0xff] }
 0x470   : > { %v463_v38 = vadd.f32 %v1494_v24, %v389_v36  ;;  %1342 = vrcp.f32 %v1071_v37  ;;  %v954_v24 = vld [vmem:[#allocation4 + $0x18] sm:$0xff] }
 0x471   : > { %v767_v46 = vpop.permute.xlu0 %766  ;;  %v960_v55 = vmul.f32 %v958_v51, %v954_v24 }
 0x472   : > { %464 = vst.msk [vmem:[#allocation4] sm:$0xff] %vm273_vm0, %v463_v38  ;;  %v769_v50 = vmul.f32 %v767_v46, %v763_v45 }
 0x475   : > { %v1339_v39 = vpop.eup %1338 }
 0x476   : > { %1057 = vperm.xlu0 %1318, %v1339_v39  }
 0x479   : > { %v1341_v40 = vpop.eup %1340  ;;  %v1043_v6 = vld [vmem:[#allocation4] sm:$0xff] }
 0x47a   : > { %1066 = vperm.xlu1 %1319, %v1341_v40  }
 0x47d   : > { %v1343_v41 = vpop.eup %1342 }
 0x47e   : > { %1075 = vperm.xlu0 %1318, %v1343_v41  }
 0x493   : > { %v651_v47 = vpop.f32.mrf.mxu0 }
 0x494   : > { %v655_v48 = vadd.f32 %v651_v47, %v577_v44 }
 0x495   : > { %v1263_v49 = vpop.f32.mrf.mxu0 }
 0x496   : > { %656 = vst.msk [vmem:[#allocation4 + $0x8] sm:$0xff] %vm273_vm0, %v655_v48 }
 0x497   : > { %v842_v52 = vpop.f32.mrf.mxu0 }
 0x498   : > { %v846_v53 = vadd.f32 %v842_v52, %v769_v50 }
 0x499   : > { %v1273_v54 = vpop.f32.mrf.mxu0 }
 0x49a   : > { %847 = vst.msk [vmem:[#allocation4 + $0x10] sm:$0xff] %vm273_vm0, %v846_v53  ;;  %v1049_v59 = vpop.permute.xlu1 %1048 }
 0x49b   : > { %v1033_v56 = vpop.f32.mrf.mxu0  ;;  %v1051_v8 = vmul.f32 %v1049_v59, %v1043_v6 }
 0x49c   : > { %v1037_v57 = vadd.f32 %v1033_v56, %v960_v55 }
 0x49d   : > { %v1283_v58 = vpop.f32.mrf.mxu0  ;;  %v1052_v61 = vld [vmem:[#allocation4 + $0x8] sm:$0xff] }
 0x49e   : > { %1038 = vst.msk [vmem:[#allocation4 + $0x18] sm:$0xff] %vm273_vm0, %v1037_v57 }
 0x4a1   : > { %v1061_v1 = vld [vmem:[#allocation4 + $0x10] sm:$0xff] }
 0x4a5   : > { %v1070_v4 = vld [vmem:[#allocation4 + $0x18] sm:$0xff] }
 0x4f1   : > { %v1058_v60 = vpop.permute.xlu0 %1057 }
 0x4f2   : > { %v1060_v62 = vmul.f32 %v1058_v60, %v1052_v61 }
 0x4f4   : > { %1080 = vrot.lane.b32.xlu1 %v1060_v62, %s1375_s29 }
 0x4f5   : > { %v1067_v63 = vpop.permute.xlu1 %1066 }
 0x4f6   : > { %v1069_v2 = vmul.f32 %v1067_v63, %v1061_v1 }
 0x4f8   : > { %1084 = vrot.lane.b32.xlu0 %v1069_v2, %s1376_s30 }
 0x4f9   : > { %v1076_v3 = vpop.permute.xlu0 %1075 }
 0x4fa   : > { %v1078_v5 = vmul.f32 %v1076_v3, %v1070_v4 }
 0x4fc   : > { %1088 = vrot.lane.b32.xlu1 %v1078_v5, %s1377_s4 }
 0x566   : > { %v1081_v7 = vpop.permute.xlu1 %1080 }
 0x567   : > { %v1091_v13 = vsel %vm273_vm0, %v1051_v8, %v1081_v7 }
 0x56a   : > { %v1085_v10 = vpop.permute.xlu0 %1084 }
 0x56b   : > { %v1093_v14 = vsel %vm1092_vm3, %v1091_v13, %v1085_v10 }
 0x56e   : > { %v1089_v0 = vpop.permute.xlu1 %1088 }
 0x56f   : > { %v1095_v15 = vsel %vm1094_vm4, %v1093_v14, %v1089_v0 }
 0x570   : > { %1097 = vst.msk [vmem:[%s259_s7] sm:$0xff] %vm1096_vm5, %v1095_v15 }
 0x571 PF: > { %s13_s14 = sadd.s32 1, %s1366_s14   ;;  %s1548_s12 = smov %s1362_s13 }
 0x572   : > { %p10_p5 = scmp.ge.s32.totalorder %s13_s14, 4   ;;  %s1549_s13 = smov %s1551_s15 }
 0x574   :  { %12 = sbr.rel (!%p10_p5) target bundleno = 2 (0x2), region = 85 }

</bundles_post_ra>
